<compile_context>
chip_gen: v7x
topology: tpu7x:2x2x1
jax: 0.10.0
libtpu: 0.0.40
codegen_flags: <defaults>
</compile_context>

<pallas_src>
import functools

import jax
import jax.numpy as jnp
from jax.experimental import pallas as pl
from jax.experimental.pallas import tpu as pltpu

HIDDEN = 128
NUM_BLOCKS = 3          # layer_size = [128, 128, 128]  -> skip is Identity
NUM_CLASSES = 6
LN_EPS = 1e-5           # torch.nn.LayerNorm default eps

_MiB = 1024 * 1024
_VMEM_WORKING_BUDGET = 44 * _MiB   # pipeline working-set budget (fits v7x 64 MiB)
_VMEM_HEADROOM = 12 * _MiB         # slack for Mosaic internal scratch
_VMEM_CAP = 60 * _MiB


def _round_up(x, m):
    return (x + m - 1) // m * m


def _cdiv(a, b):
    return -(-a // b)


def _elementwise_dtype(compute_dtype):
    """bf16 elementwise tail only where the VPU has bf16 ALUs (v6e / v7x)."""
    if jnp.dtype(compute_dtype) != jnp.dtype(jnp.bfloat16):
        return jnp.float32
    try:
        kind = jax.devices()[0].device_kind.lower()
    except Exception:  # pragma: no cover - defensive
        kind = ""
    if ("v6" in kind) or ("v7" in kind):
        return jnp.bfloat16
    return jnp.float32   # v5e (and older / CPU-interpret): no bf16 VALUs


def _choose_batch_tile(B, tb, c_pad, hidden, out_pad, out_bytes, budget):
    """Batch tile: multiple of 16, VMEM-bounded, minimal padding waste, and
    at least 2 grid steps for large B so v7x's second TensorCore has work."""
    # Per-row pipeline VMEM: double-buffered f32 x tile + double-buffered out
    # tile + generous allowance for in-kernel f32/bf16 intermediates.
    row_bytes = 2 * c_pad * 4 + 2 * out_pad * out_bytes + 24 * hidden * 4
    max_tb = max((budget // row_bytes) // 16 * 16, 16)
    tb = max(min(tb, max_tb) // 16 * 16, 16)
    min_steps = 2 if B > 16 else 1
    n_steps = max(_cdiv(B, tb), min_steps)
    tb_eff = max(_round_up(_cdiv(B, n_steps), 16), 16)
    return tb_eff, n_steps


def mlp_deep_residual_kernel(
    x_ref,        # (TB, C_pad)  f32      flattened image tile (streamed)
    w0_ref,       # (C_pad, 128) mm dtype first Linear, bias=False
    w1_ref,       # (NB, 128, 128) mm     per-block Linear #1 weight
    b1_ref,       # (NB, 128)   f32       per-block Linear #1 bias
    g1_ref,       # (NB, 128)   ew dtype  per-block LayerNorm #1 gamma
    be1_ref,      # (NB, 128)   ew dtype  per-block LayerNorm #1 beta
    w2_ref,       # (NB, 128, 128) mm     per-block Linear #2 weight
    b2_ref,       # (NB, 128)   f32       per-block Linear #2 bias
    g2_ref,       # (NB, 128)   ew dtype  per-block LayerNorm #2 gamma
    be2_ref,      # (NB, 128)   ew dtype  per-block LayerNorm #2 beta
    wo_ref,       # (128, OUT_PAD) mm     final Linear, zero-padded columns
    out_ref,      # (TB, OUT_PAD) out dtype
):
    mm_dtype = w0_ref.dtype
    ew_dtype = g1_ref.dtype

    def ln_relu(y_f32, gamma, beta):
        # Reductions + rsqrt in f32 (XLU / EUP); wide elementwise tail
        # (normalize, affine, ReLU) in ew_dtype on the VPU.
        mu = jnp.mean(y_f32, axis=-1, keepdims=True)
        msq = jnp.mean(y_f32 * y_f32, axis=-1, keepdims=True)
        var = jnp.maximum(msq - mu * mu, 0.0)
        inv = jax.lax.rsqrt(var + LN_EPS)            # (TB, 1) f32
        scale = inv.astype(ew_dtype)                 # per-row fold (cheap casts)
        shift = (-mu * inv).astype(ew_dtype)
        y = y_f32.astype(ew_dtype) * scale + shift
        y = y * gamma + beta
        return jnp.maximum(y, 0.0)                   # ReLU in ew_dtype

    # Flatten -> Linear(c, 128, bias=False); cast x to the matmul dtype here
    # (x streams in as f32, so the wrapper never round-trips it through HBM).
    x = x_ref[...].astype(mm_dtype)
    h = jnp.dot(x, w0_ref[...], preferred_element_type=jnp.float32)

    # Residual blocks: skip(x) + Seq(Linear, LN, ReLU, Linear, LN, ReLU)(x).
    # in_channels == out_channels == 128 for every block => skip = Identity.
    num_blocks = w1_ref.shape[0]
    for i in range(num_blocks):          # static unroll (3 iterations)
        b1 = b1_ref[i][None, :]
        g1 = g1_ref[i][None, :]
        be1 = be1_ref[i][None, :]
        b2 = b2_ref[i][None, :]
        g2 = g2_ref[i][None, :]
        be2 = be2_ref[i][None, :]

        y = jnp.dot(h.astype(mm_dtype), w1_ref[i],
                    preferred_element_type=jnp.float32) + b1
        y = ln_relu(y, g1, be1)
        y = jnp.dot(y.astype(mm_dtype), w2_ref[i],
                    preferred_element_type=jnp.float32) + b2
        y = ln_relu(y, g2, be2)
        h = h + y.astype(jnp.float32)    # residual stream stays f32

    # Final classifier: Linear(128, num_classes, bias=False), lane-dense store.
    out_ref[...] = jnp.dot(h.astype(mm_dtype), wo_ref[...],
                           preferred_element_type=jnp.float32
                           ).astype(out_ref.dtype)


def init_params(key, c_in, hidden=HIDDEN, num_blocks=NUM_BLOCKS,
                num_classes=NUM_CLASSES):
    """Deterministic synthetic parameters (shapes match the torch module)."""
    ks = jax.random.split(key, 8)
    scale0 = 1.0 / jnp.sqrt(c_in)
    scaleh = 1.0 / jnp.sqrt(hidden)
    w0 = jax.random.uniform(ks[0], (c_in, hidden), jnp.float32, -scale0, scale0)
    w1 = jax.random.uniform(ks[1], (num_blocks, hidden, hidden), jnp.float32,
                            -scaleh, scaleh)
    b1 = jax.random.uniform(ks[2], (num_blocks, hidden), jnp.float32,
                            -scaleh, scaleh)
    g1 = jnp.ones((num_blocks, hidden), jnp.float32)
    be1 = jnp.zeros((num_blocks, hidden), jnp.float32)
    w2 = jax.random.uniform(ks[3], (num_blocks, hidden, hidden), jnp.float32,
                            -scaleh, scaleh)
    b2 = jax.random.uniform(ks[4], (num_blocks, hidden), jnp.float32,
                            -scaleh, scaleh)
    g2 = jnp.ones((num_blocks, hidden), jnp.float32)
    be2 = jnp.zeros((num_blocks, hidden), jnp.float32)
    wo = jax.random.uniform(ks[5], (hidden, num_classes), jnp.float32,
                            -scaleh, scaleh)
    return (w0, w1, b1, g1, be1, w2, b2, g2, be2, wo)


@functools.partial(jax.jit, static_argnames=("tb", "compute_dtype"))
def mlp_classifier_deep_residual(x_nchw, params, *, tb=1024,
                                 compute_dtype=jnp.bfloat16):
    """x_nchw: (B, 3, H, W) float32. Returns logits (B, num_classes) f32."""
    (w0, w1, b1, g1, be1, w2, b2, g2, be2, wo) = params
    B = x_nchw.shape[0]
    num_classes = wo.shape[-1]
    nb, hidden, _ = w1.shape

    is_bf16 = jnp.dtype(compute_dtype) == jnp.dtype(jnp.bfloat16)
    ew_dtype = _elementwise_dtype(compute_dtype)
    out_dtype = jnp.bfloat16 if is_bf16 else jnp.float32

    # Flatten only (free relayout for contiguous NCHW); x is streamed into the
    # kernel as f32 and cast there, so no extra HBM pass over the activations.
    x_flat = x_nchw.reshape(B, -1)
    c_in = x_flat.shape[1]

    # Pad the feature dim to a lane multiple only if needed (zeros -> no-op).
    c_pad = _round_up(c_in, 128)
    if c_pad != c_in:
        x_flat = jnp.pad(x_flat, ((0, 0), (0, c_pad - c_in)))
        w0 = jnp.pad(w0, ((0, c_pad - c_in), (0, 0)))

    # Pad the classifier to a lane-dense 128-wide output slab (zero columns).
    out_pad = _round_up(max(num_classes, 128), 128)
    wo_p = jnp.pad(wo, ((0, 0), (0, out_pad - num_classes)))

    # Matmul weights in compute dtype; biases stay f32; LN affine in ew dtype.
    w0_c = w0.astype(compute_dtype)
    w1_c = w1.astype(compute_dtype)
    w2_c = w2.astype(compute_dtype)
    wo_c = wo_p.astype(compute_dtype)
    g1_c, be1_c = g1.astype(ew_dtype), be1.astype(ew_dtype)
    g2_c, be2_c = g2.astype(ew_dtype), be2.astype(ew_dtype)

    # Batch tile: VMEM-bounded, padding-minimizing, >=2 steps for large B.
    out_bytes = jnp.dtype(out_dtype).itemsize
    mm_bytes = jnp.dtype(compute_dtype).itemsize
    weight_bytes = ((c_pad * hidden + 2 * nb * hidden * hidden
                     + hidden * out_pad) * mm_bytes + 6 * nb * hidden * 4)
    budget = max(_VMEM_WORKING_BUDGET - 2 * weight_bytes, 8 * _MiB)
    tb_eff, n_steps = _choose_batch_tile(B, tb, c_pad, hidden, out_pad,
                                         out_bytes, budget)
    b_pad = n_steps * tb_eff
    if b_pad != B:
        x_flat = jnp.pad(x_flat, ((0, b_pad - B), (0, 0)))

    # VMEM limit from the actual footprint (+ headroom), not all of v7x's VMEM.
    work_bytes = (2 * tb_eff * c_pad * 4            # x tile, double-buffered f32
                  + 2 * tb_eff * out_pad * out_bytes
                  + 2 * weight_bytes)               # conservative: 2 buffers
    vmem_limit = int(min(max(work_bytes + _VMEM_HEADROOM, 16 * _MiB),
                         _VMEM_CAP))

    rep2 = lambda i: (0, 0)
    rep3 = lambda i: (0, 0, 0)

    grid_spec = pltpu.PrefetchScalarGridSpec(
        num_scalar_prefetch=0,
        grid=(n_steps,),
        in_specs=[
            pl.BlockSpec((tb_eff, c_pad), lambda i: (i, 0)),   # x (streamed f32)
            pl.BlockSpec((c_pad, hidden), rep2),               # w0      (resident)
            pl.BlockSpec((nb, hidden, hidden), rep3),          # w1
            pl.BlockSpec((nb, hidden), rep2),                  # b1
            pl.BlockSpec((nb, hidden), rep2),                  # g1
            pl.BlockSpec((nb, hidden), rep2),                  # be1
            pl.BlockSpec((nb, hidden, hidden), rep3),          # w2
            pl.BlockSpec((nb, hidden), rep2),                  # b2
            pl.BlockSpec((nb, hidden), rep2),                  # g2
            pl.BlockSpec((nb, hidden), rep2),                  # be2
            pl.BlockSpec((hidden, out_pad), rep2),             # wo (padded)
        ],
        out_specs=pl.BlockSpec((tb_eff, out_pad), lambda i: (i, 0)),
    )

    out = pl.pallas_call(
        mlp_deep_residual_kernel,
        out_shape=jax.ShapeDtypeStruct((b_pad, out_pad), out_dtype),
        grid_spec=grid_spec,
        compiler_params=pltpu.CompilerParams(
            dimension_semantics=("parallel",),      # megacore sharding on v7x
            vmem_limit_bytes=vmem_limit,
        ),
    )(x_flat, w0_c, w1_c, b1, g1_c, be1_c, w2_c, b2, g2_c, be2_c, wo_c)

    return out[:B, :num_classes].astype(jnp.float32)


def reference_forward(x_nchw, params, compute_dtype=jnp.float32, ew_dtype=None):
    """Pure-JAX reference. With f32 dtypes this matches the PyTorch module
    (torch-style two-pass LayerNorm); with bf16 dtypes it mirrors the kernel's
    mixed-precision recipe."""
    if ew_dtype is None:
        ew_dtype = compute_dtype
    (w0, w1, b1, g1, be1, w2, b2, g2, be2, wo) = params

    def ln_relu(y, gamma, beta):
        mu = jnp.mean(y, axis=-1, keepdims=True)
        var = jnp.mean((y - mu) ** 2, axis=-1, keepdims=True)
        inv = jax.lax.rsqrt(var + LN_EPS)
        scale = inv.astype(ew_dtype)
        shift = (-mu * inv).astype(ew_dtype)
        out = (y.astype(ew_dtype) * scale + shift) * gamma.astype(ew_dtype) \
            + beta.astype(ew_dtype)
        return jnp.maximum(out, 0.0)

    B = x_nchw.shape[0]
    h = jnp.dot(x_nchw.reshape(B, -1).astype(compute_dtype),
                w0.astype(compute_dtype), preferred_element_type=jnp.float32)
    for i in range(w1.shape[0]):
        y = jnp.dot(h.astype(compute_dtype), w1[i].astype(compute_dtype),
                    preferred_element_type=jnp.float32) + b1[i]
        y = ln_relu(y, g1[i], be1[i])
        y = jnp.dot(y.astype(compute_dtype), w2[i].astype(compute_dtype),
                    preferred_element_type=jnp.float32) + b2[i]
        y = ln_relu(y, g2[i], be2[i])
        h = h + y.astype(jnp.float32)
    return jnp.dot(h.astype(compute_dtype), wo.astype(compute_dtype),
                   preferred_element_type=jnp.float32)


if __name__ == "__main__":
    # Small shapes consistent with the module: h=w=16 images, 3 channels.
    B, C, H, W = 2, 3, 16, 16
    key = jax.random.PRNGKey(0)
    kx, kp = jax.random.split(key)
    x = jax.random.normal(kx, (B, C, H, W), jnp.float32)
    params = init_params(kp, c_in=C * H * W)

    # Default fast path: bf16 matmuls, f32 MXU accumulation / LN reductions.
    logits = jax.block_until_ready(mlp_classifier_deep_residual(x, params))
    assert logits.shape == (B, NUM_CLASSES)
    assert logits.dtype == jnp.float32

    # Tight check against a reference that mirrors the kernel's precision...
    ew = _elementwise_dtype(jnp.bfloat16)
    ref_mixed = reference_forward(x, params, compute_dtype=jnp.bfloat16,
                                  ew_dtype=ew)
    assert jnp.allclose(logits, ref_mixed, atol=2e-2, rtol=2e-2)

    # ...and a coarse sanity bound against the f32 (PyTorch-equivalent) math.
    ref_f32 = reference_forward(x, params, compute_dtype=jnp.float32)
    assert jnp.allclose(logits, ref_f32, atol=3e-1, rtol=5e-2)

    # Full-f32 path (same kernel, dtype switch) checked tightly vs the f32 ref.
    logits_f32 = jax.block_until_ready(
        mlp_classifier_deep_residual(x, params, compute_dtype=jnp.float32))
    assert jnp.allclose(logits_f32, ref_f32, atol=1e-4, rtol=1e-4)

    print("KERNEL_OK")
</pallas_src>

<mosaic_0001>
module attributes {stable_mosaic.version = 11 : i64} {
  func.func @mlp_deep_residual_kernel(%arg0: i32, %arg1: memref<16x768xf32, #tpu.memory_space<vmem>>, %arg2: memref<768x128xbf16, #tpu.memory_space<vmem>>, %arg3: memref<3x128x128xbf16, #tpu.memory_space<vmem>>, %arg4: memref<3x128xf32, #tpu.memory_space<vmem>>, %arg5: memref<3x128xf32, #tpu.memory_space<vmem>>, %arg6: memref<3x128xf32, #tpu.memory_space<vmem>>, %arg7: memref<3x128x128xbf16, #tpu.memory_space<vmem>>, %arg8: memref<3x128xf32, #tpu.memory_space<vmem>>, %arg9: memref<3x128xf32, #tpu.memory_space<vmem>>, %arg10: memref<3x128xf32, #tpu.memory_space<vmem>>, %arg11: memref<128x128xbf16, #tpu.memory_space<vmem>>, %arg12: memref<16x128xbf16, #tpu.memory_space<vmem>>) attributes {dimension_semantics = [#tpu.dimension_semantics<parallel>], iteration_bounds = array<i64: 1>, scalar_prefetch = 0 : i64, scratch_operands = 0 : i64, tpu.core_type = #tpu.core_type<tc>, window_params = [{transform_indices = @transform_0, window_bounds = array<i64: 16, 768>}, {pipeline_mode = #tpu.pipeline_mode<synchronous>, transform_indices = @transform_1, window_bounds = array<i64: 768, 128>}, {pipeline_mode = #tpu.pipeline_mode<synchronous>, transform_indices = @transform_2, window_bounds = array<i64: 3, 128, 128>}, {pipeline_mode = #tpu.pipeline_mode<synchronous>, transform_indices = @transform_3, window_bounds = array<i64: 3, 128>}, {pipeline_mode = #tpu.pipeline_mode<synchronous>, transform_indices = @transform_4, window_bounds = array<i64: 3, 128>}, {pipeline_mode = #tpu.pipeline_mode<synchronous>, transform_indices = @transform_5, window_bounds = array<i64: 3, 128>}, {pipeline_mode = #tpu.pipeline_mode<synchronous>, transform_indices = @transform_6, window_bounds = array<i64: 3, 128, 128>}, {pipeline_mode = #tpu.pipeline_mode<synchronous>, transform_indices = @transform_7, window_bounds = array<i64: 3, 128>}, {pipeline_mode = #tpu.pipeline_mode<synchronous>, transform_indices = @transform_8, window_bounds = array<i64: 3, 128>}, {pipeline_mode = #tpu.pipeline_mode<synchronous>, transform_indices = @transform_9, window_bounds = array<i64: 3, 128>}, {pipeline_mode = #tpu.pipeline_mode<synchronous>, transform_indices = @transform_10, window_bounds = array<i64: 128, 128>}, {transform_indices = @transform_11, window_bounds = array<i64: 16, 128>}]} {
    %c0 = arith.constant 0 : index
    %c0_0 = arith.constant 0 : index
    %0 = vector.load %arg1[%c0, %c0_0] : memref<16x768xf32, #tpu.memory_space<vmem>>, vector<16x768xf32>
    %1 = arith.truncf %0 : vector<16x768xf32> to vector<16x768xbf16>
    %c0_1 = arith.constant 0 : index
    %c0_2 = arith.constant 0 : index
    %2 = vector.load %arg2[%c0_1, %c0_2] : memref<768x128xbf16, #tpu.memory_space<vmem>>, vector<768x128xbf16>
    %cst = arith.constant dense<0.000000e+00> : vector<16x128xf32>
    %3 = tpu.matmul %1, %2, %cst {dimension_numbers = #tpu.dot_dimension_numbers<[1], [0], [0], [1], [0, 0, 1, 1], [], []>} : vector<16x768xbf16>, vector<768x128xbf16>, vector<16x128xf32> -> vector<16x128xf32>
    %c0_3 = arith.constant 0 : index
    %c0_4 = arith.constant 0 : index
    %4 = vector.load %arg4[%c0_3, %c0_4] : memref<3x128xf32, #tpu.memory_space<vmem>>, vector<1x128xf32>
    %5 = vector.shape_cast %4 : vector<1x128xf32> to vector<128xf32>
    %6 = vector.shape_cast %5 : vector<128xf32> to vector<1x128xf32>
    %c0_5 = arith.constant 0 : index
    %c0_6 = arith.constant 0 : index
    %7 = vector.load %arg5[%c0_5, %c0_6] : memref<3x128xf32, #tpu.memory_space<vmem>>, vector<1x128xf32>
    %8 = vector.shape_cast %7 : vector<1x128xf32> to vector<128xf32>
    %9 = vector.shape_cast %8 : vector<128xf32> to vector<1x128xf32>
    %c0_7 = arith.constant 0 : index
    %c0_8 = arith.constant 0 : index
    %10 = vector.load %arg6[%c0_7, %c0_8] : memref<3x128xf32, #tpu.memory_space<vmem>>, vector<1x128xf32>
    %11 = vector.shape_cast %10 : vector<1x128xf32> to vector<128xf32>
    %12 = vector.shape_cast %11 : vector<128xf32> to vector<1x128xf32>
    %c0_9 = arith.constant 0 : index
    %c0_10 = arith.constant 0 : index
    %13 = vector.load %arg8[%c0_9, %c0_10] : memref<3x128xf32, #tpu.memory_space<vmem>>, vector<1x128xf32>
    %14 = vector.shape_cast %13 : vector<1x128xf32> to vector<128xf32>
    %15 = vector.shape_cast %14 : vector<128xf32> to vector<1x128xf32>
    %c0_11 = arith.constant 0 : index
    %c0_12 = arith.constant 0 : index
    %16 = vector.load %arg9[%c0_11, %c0_12] : memref<3x128xf32, #tpu.memory_space<vmem>>, vector<1x128xf32>
    %17 = vector.shape_cast %16 : vector<1x128xf32> to vector<128xf32>
    %18 = vector.shape_cast %17 : vector<128xf32> to vector<1x128xf32>
    %c0_13 = arith.constant 0 : index
    %c0_14 = arith.constant 0 : index
    %19 = vector.load %arg10[%c0_13, %c0_14] : memref<3x128xf32, #tpu.memory_space<vmem>>, vector<1x128xf32>
    %20 = vector.shape_cast %19 : vector<1x128xf32> to vector<128xf32>
    %21 = vector.shape_cast %20 : vector<128xf32> to vector<1x128xf32>
    %22 = arith.truncf %3 : vector<16x128xf32> to vector<16x128xbf16>
    %c0_15 = arith.constant 0 : index
    %c0_16 = arith.constant 0 : index
    %c0_17 = arith.constant 0 : index
    %23 = vector.load %arg3[%c0_15, %c0_16, %c0_17] : memref<3x128x128xbf16, #tpu.memory_space<vmem>>, vector<1x128x128xbf16>
    %24 = vector.shape_cast %23 : vector<1x128x128xbf16> to vector<128x128xbf16>
    %cst_18 = arith.constant dense<0.000000e+00> : vector<16x128xf32>
    %25 = tpu.matmul %22, %24, %cst_18 {dimension_numbers = #tpu.dot_dimension_numbers<[1], [0], [0], [1], [0, 0, 1, 1], [], []>} : vector<16x128xbf16>, vector<128x128xbf16>, vector<16x128xf32> -> vector<16x128xf32>
    %26 = vector.broadcast %6 : vector<1x128xf32> to vector<16x128xf32>
    %27 = arith.addf %25, %26 : vector<16x128xf32>
    %cst_19 = arith.constant dense<0.000000e+00> : vector<16xf32>
    %28 = vector.multi_reduction <add>, %27, %cst_19 [1] : vector<16x128xf32> to vector<16xf32>
    %29 = vector.shape_cast %28 : vector<16xf32> to vector<16x1xf32>
    %cst_20 = arith.constant 1.280000e+02 : f32
    %30 = vector.broadcast %cst_20 : f32 to vector<16x1xf32>
    %31 = arith.divf %29, %30 : vector<16x1xf32>
    %32 = arith.mulf %27, %27 : vector<16x128xf32>
    %cst_21 = arith.constant dense<0.000000e+00> : vector<16xf32>
    %33 = vector.multi_reduction <add>, %32, %cst_21 [1] : vector<16x128xf32> to vector<16xf32>
    %34 = vector.shape_cast %33 : vector<16xf32> to vector<16x1xf32>
    %cst_22 = arith.constant 1.280000e+02 : f32
    %35 = vector.broadcast %cst_22 : f32 to vector<16x1xf32>
    %36 = arith.divf %34, %35 : vector<16x1xf32>
    %37 = arith.mulf %31, %31 : vector<16x1xf32>
    %38 = arith.subf %36, %37 : vector<16x1xf32>
    %cst_23 = arith.constant 0.000000e+00 : f32
    %39 = vector.broadcast %cst_23 : f32 to vector<16x1xf32>
    %40 = arith.maximumf %38, %39 : vector<16x1xf32>
    %cst_24 = arith.constant 9.99999974E-6 : f32
    %41 = vector.broadcast %cst_24 : f32 to vector<16x1xf32>
    %42 = arith.addf %40, %41 : vector<16x1xf32>
    %43 = math.rsqrt %42 : vector<16x1xf32>
    %cst_25 = arith.constant 0.000000e+00 : f32
    %44 = vector.broadcast %cst_25 : f32 to vector<16x1xf32>
    %45 = arith.subf %44, %31 : vector<16x1xf32>
    %46 = arith.mulf %45, %43 : vector<16x1xf32>
    %47 = vector.broadcast %43 : vector<16x1xf32> to vector<16x128xf32>
    %48 = arith.mulf %27, %47 : vector<16x128xf32>
    %49 = vector.broadcast %46 : vector<16x1xf32> to vector<16x128xf32>
    %50 = arith.addf %48, %49 : vector<16x128xf32>
    %51 = vector.broadcast %9 : vector<1x128xf32> to vector<16x128xf32>
    %52 = arith.mulf %50, %51 : vector<16x128xf32>
    %53 = vector.broadcast %12 : vector<1x128xf32> to vector<16x128xf32>
    %54 = arith.addf %52, %53 : vector<16x128xf32>
    %cst_26 = arith.constant 0.000000e+00 : f32
    %55 = vector.broadcast %cst_26 : f32 to vector<16x128xf32>
    %56 = arith.maximumf %54, %55 : vector<16x128xf32>
    %57 = arith.truncf %56 : vector<16x128xf32> to vector<16x128xbf16>
    %c0_27 = arith.constant 0 : index
    %c0_28 = arith.constant 0 : index
    %c0_29 = arith.constant 0 : index
    %58 = vector.load %arg7[%c0_27, %c0_28, %c0_29] : memref<3x128x128xbf16, #tpu.memory_space<vmem>>, vector<1x128x128xbf16>
    %59 = vector.shape_cast %58 : vector<1x128x128xbf16> to vector<128x128xbf16>
    %cst_30 = arith.constant dense<0.000000e+00> : vector<16x128xf32>
    %60 = tpu.matmul %57, %59, %cst_30 {dimension_numbers = #tpu.dot_dimension_numbers<[1], [0], [0], [1], [0, 0, 1, 1], [], []>} : vector<16x128xbf16>, vector<128x128xbf16>, vector<16x128xf32> -> vector<16x128xf32>
    %61 = vector.broadcast %15 : vector<1x128xf32> to vector<16x128xf32>
    %62 = arith.addf %60, %61 : vector<16x128xf32>
    %cst_31 = arith.constant dense<0.000000e+00> : vector<16xf32>
    %63 = vector.multi_reduction <add>, %62, %cst_31 [1] : vector<16x128xf32> to vector<16xf32>
    %64 = vector.shape_cast %63 : vector<16xf32> to vector<16x1xf32>
    %cst_32 = arith.constant 1.280000e+02 : f32
    %65 = vector.broadcast %cst_32 : f32 to vector<16x1xf32>
    %66 = arith.divf %64, %65 : vector<16x1xf32>
    %67 = arith.mulf %62, %62 : vector<16x128xf32>
    %cst_33 = arith.constant dense<0.000000e+00> : vector<16xf32>
    %68 = vector.multi_reduction <add>, %67, %cst_33 [1] : vector<16x128xf32> to vector<16xf32>
    %69 = vector.shape_cast %68 : vector<16xf32> to vector<16x1xf32>
    %cst_34 = arith.constant 1.280000e+02 : f32
    %70 = vector.broadcast %cst_34 : f32 to vector<16x1xf32>
    %71 = arith.divf %69, %70 : vector<16x1xf32>
    %72 = arith.mulf %66, %66 : vector<16x1xf32>
    %73 = arith.subf %71, %72 : vector<16x1xf32>
    %cst_35 = arith.constant 0.000000e+00 : f32
    %74 = vector.broadcast %cst_35 : f32 to vector<16x1xf32>
    %75 = arith.maximumf %73, %74 : vector<16x1xf32>
    %cst_36 = arith.constant 9.99999974E-6 : f32
    %76 = vector.broadcast %cst_36 : f32 to vector<16x1xf32>
    %77 = arith.addf %75, %76 : vector<16x1xf32>
    %78 = math.rsqrt %77 : vector<16x1xf32>
    %cst_37 = arith.constant 0.000000e+00 : f32
    %79 = vector.broadcast %cst_37 : f32 to vector<16x1xf32>
    %80 = arith.subf %79, %66 : vector<16x1xf32>
    %81 = arith.mulf %80, %78 : vector<16x1xf32>
    %82 = vector.broadcast %78 : vector<16x1xf32> to vector<16x128xf32>
    %83 = arith.mulf %62, %82 : vector<16x128xf32>
    %84 = vector.broadcast %81 : vector<16x1xf32> to vector<16x128xf32>
    %85 = arith.addf %83, %84 : vector<16x128xf32>
    %86 = vector.broadcast %18 : vector<1x128xf32> to vector<16x128xf32>
    %87 = arith.mulf %85, %86 : vector<16x128xf32>
    %88 = vector.broadcast %21 : vector<1x128xf32> to vector<16x128xf32>
    %89 = arith.addf %87, %88 : vector<16x128xf32>
    %cst_38 = arith.constant 0.000000e+00 : f32
    %90 = vector.broadcast %cst_38 : f32 to vector<16x128xf32>
    %91 = arith.maximumf %89, %90 : vector<16x128xf32>
    %92 = arith.addf %3, %91 : vector<16x128xf32>
    %c1 = arith.constant 1 : index
    %c0_39 = arith.constant 0 : index
    %93 = vector.load %arg4[%c1, %c0_39] : memref<3x128xf32, #tpu.memory_space<vmem>>, vector<1x128xf32>
    %94 = vector.shape_cast %93 : vector<1x128xf32> to vector<128xf32>
    %95 = vector.shape_cast %94 : vector<128xf32> to vector<1x128xf32>
    %c1_40 = arith.constant 1 : index
    %c0_41 = arith.constant 0 : index
    %96 = vector.load %arg5[%c1_40, %c0_41] : memref<3x128xf32, #tpu.memory_space<vmem>>, vector<1x128xf32>
    %97 = vector.shape_cast %96 : vector<1x128xf32> to vector<128xf32>
    %98 = vector.shape_cast %97 : vector<128xf32> to vector<1x128xf32>
    %c1_42 = arith.constant 1 : index
    %c0_43 = arith.constant 0 : index
    %99 = vector.load %arg6[%c1_42, %c0_43] : memref<3x128xf32, #tpu.memory_space<vmem>>, vector<1x128xf32>
    %100 = vector.shape_cast %99 : vector<1x128xf32> to vector<128xf32>
    %101 = vector.shape_cast %100 : vector<128xf32> to vector<1x128xf32>
    %c1_44 = arith.constant 1 : index
    %c0_45 = arith.constant 0 : index
    %102 = vector.load %arg8[%c1_44, %c0_45] : memref<3x128xf32, #tpu.memory_space<vmem>>, vector<1x128xf32>
    %103 = vector.shape_cast %102 : vector<1x128xf32> to vector<128xf32>
    %104 = vector.shape_cast %103 : vector<128xf32> to vector<1x128xf32>
    %c1_46 = arith.constant 1 : index
    %c0_47 = arith.constant 0 : index
    %105 = vector.load %arg9[%c1_46, %c0_47] : memref<3x128xf32, #tpu.memory_space<vmem>>, vector<1x128xf32>
    %106 = vector.shape_cast %105 : vector<1x128xf32> to vector<128xf32>
    %107 = vector.shape_cast %106 : vector<128xf32> to vector<1x128xf32>
    %c1_48 = arith.constant 1 : index
    %c0_49 = arith.constant 0 : index
    %108 = vector.load %arg10[%c1_48, %c0_49] : memref<3x128xf32, #tpu.memory_space<vmem>>, vector<1x128xf32>
    %109 = vector.shape_cast %108 : vector<1x128xf32> to vector<128xf32>
    %110 = vector.shape_cast %109 : vector<128xf32> to vector<1x128xf32>
    %111 = arith.truncf %92 : vector<16x128xf32> to vector<16x128xbf16>
    %c1_50 = arith.constant 1 : index
    %c0_51 = arith.constant 0 : index
    %c0_52 = arith.constant 0 : index
    %112 = vector.load %arg3[%c1_50, %c0_51, %c0_52] : memref<3x128x128xbf16, #tpu.memory_space<vmem>>, vector<1x128x128xbf16>
    %113 = vector.shape_cast %112 : vector<1x128x128xbf16> to vector<128x128xbf16>
    %cst_53 = arith.constant dense<0.000000e+00> : vector<16x128xf32>
    %114 = tpu.matmul %111, %113, %cst_53 {dimension_numbers = #tpu.dot_dimension_numbers<[1], [0], [0], [1], [0, 0, 1, 1], [], []>} : vector<16x128xbf16>, vector<128x128xbf16>, vector<16x128xf32> -> vector<16x128xf32>
    %115 = vector.broadcast %95 : vector<1x128xf32> to vector<16x128xf32>
    %116 = arith.addf %114, %115 : vector<16x128xf32>
    %cst_54 = arith.constant dense<0.000000e+00> : vector<16xf32>
    %117 = vector.multi_reduction <add>, %116, %cst_54 [1] : vector<16x128xf32> to vector<16xf32>
    %118 = vector.shape_cast %117 : vector<16xf32> to vector<16x1xf32>
    %cst_55 = arith.constant 1.280000e+02 : f32
    %119 = vector.broadcast %cst_55 : f32 to vector<16x1xf32>
    %120 = arith.divf %118, %119 : vector<16x1xf32>
    %121 = arith.mulf %116, %116 : vector<16x128xf32>
    %cst_56 = arith.constant dense<0.000000e+00> : vector<16xf32>
    %122 = vector.multi_reduction <add>, %121, %cst_56 [1] : vector<16x128xf32> to vector<16xf32>
    %123 = vector.shape_cast %122 : vector<16xf32> to vector<16x1xf32>
    %cst_57 = arith.constant 1.280000e+02 : f32
    %124 = vector.broadcast %cst_57 : f32 to vector<16x1xf32>
    %125 = arith.divf %123, %124 : vector<16x1xf32>
    %126 = arith.mulf %120, %120 : vector<16x1xf32>
    %127 = arith.subf %125, %126 : vector<16x1xf32>
    %cst_58 = arith.constant 0.000000e+00 : f32
    %128 = vector.broadcast %cst_58 : f32 to vector<16x1xf32>
    %129 = arith.maximumf %127, %128 : vector<16x1xf32>
    %cst_59 = arith.constant 9.99999974E-6 : f32
    %130 = vector.broadcast %cst_59 : f32 to vector<16x1xf32>
    %131 = arith.addf %129, %130 : vector<16x1xf32>
    %132 = math.rsqrt %131 : vector<16x1xf32>
    %cst_60 = arith.constant 0.000000e+00 : f32
    %133 = vector.broadcast %cst_60 : f32 to vector<16x1xf32>
    %134 = arith.subf %133, %120 : vector<16x1xf32>
    %135 = arith.mulf %134, %132 : vector<16x1xf32>
    %136 = vector.broadcast %132 : vector<16x1xf32> to vector<16x128xf32>
    %137 = arith.mulf %116, %136 : vector<16x128xf32>
    %138 = vector.broadcast %135 : vector<16x1xf32> to vector<16x128xf32>
    %139 = arith.addf %137, %138 : vector<16x128xf32>
    %140 = vector.broadcast %98 : vector<1x128xf32> to vector<16x128xf32>
    %141 = arith.mulf %139, %140 : vector<16x128xf32>
    %142 = vector.broadcast %101 : vector<1x128xf32> to vector<16x128xf32>
    %143 = arith.addf %141, %142 : vector<16x128xf32>
    %cst_61 = arith.constant 0.000000e+00 : f32
    %144 = vector.broadcast %cst_61 : f32 to vector<16x128xf32>
    %145 = arith.maximumf %143, %144 : vector<16x128xf32>
    %146 = arith.truncf %145 : vector<16x128xf32> to vector<16x128xbf16>
    %c1_62 = arith.constant 1 : index
    %c0_63 = arith.constant 0 : index
    %c0_64 = arith.constant 0 : index
    %147 = vector.load %arg7[%c1_62, %c0_63, %c0_64] : memref<3x128x128xbf16, #tpu.memory_space<vmem>>, vector<1x128x128xbf16>
    %148 = vector.shape_cast %147 : vector<1x128x128xbf16> to vector<128x128xbf16>
    %cst_65 = arith.constant dense<0.000000e+00> : vector<16x128xf32>
    %149 = tpu.matmul %146, %148, %cst_65 {dimension_numbers = #tpu.dot_dimension_numbers<[1], [0], [0], [1], [0, 0, 1, 1], [], []>} : vector<16x128xbf16>, vector<128x128xbf16>, vector<16x128xf32> -> vector<16x128xf32>
    %150 = vector.broadcast %104 : vector<1x128xf32> to vector<16x128xf32>
    %151 = arith.addf %149, %150 : vector<16x128xf32>
    %cst_66 = arith.constant dense<0.000000e+00> : vector<16xf32>
    %152 = vector.multi_reduction <add>, %151, %cst_66 [1] : vector<16x128xf32> to vector<16xf32>
    %153 = vector.shape_cast %152 : vector<16xf32> to vector<16x1xf32>
    %cst_67 = arith.constant 1.280000e+02 : f32
    %154 = vector.broadcast %cst_67 : f32 to vector<16x1xf32>
    %155 = arith.divf %153, %154 : vector<16x1xf32>
    %156 = arith.mulf %151, %151 : vector<16x128xf32>
    %cst_68 = arith.constant dense<0.000000e+00> : vector<16xf32>
    %157 = vector.multi_reduction <add>, %156, %cst_68 [1] : vector<16x128xf32> to vector<16xf32>
    %158 = vector.shape_cast %157 : vector<16xf32> to vector<16x1xf32>
    %cst_69 = arith.constant 1.280000e+02 : f32
    %159 = vector.broadcast %cst_69 : f32 to vector<16x1xf32>
    %160 = arith.divf %158, %159 : vector<16x1xf32>
    %161 = arith.mulf %155, %155 : vector<16x1xf32>
    %162 = arith.subf %160, %161 : vector<16x1xf32>
    %cst_70 = arith.constant 0.000000e+00 : f32
    %163 = vector.broadcast %cst_70 : f32 to vector<16x1xf32>
    %164 = arith.maximumf %162, %163 : vector<16x1xf32>
    %cst_71 = arith.constant 9.99999974E-6 : f32
    %165 = vector.broadcast %cst_71 : f32 to vector<16x1xf32>
    %166 = arith.addf %164, %165 : vector<16x1xf32>
    %167 = math.rsqrt %166 : vector<16x1xf32>
    %cst_72 = arith.constant 0.000000e+00 : f32
    %168 = vector.broadcast %cst_72 : f32 to vector<16x1xf32>
    %169 = arith.subf %168, %155 : vector<16x1xf32>
    %170 = arith.mulf %169, %167 : vector<16x1xf32>
    %171 = vector.broadcast %167 : vector<16x1xf32> to vector<16x128xf32>
    %172 = arith.mulf %151, %171 : vector<16x128xf32>
    %173 = vector.broadcast %170 : vector<16x1xf32> to vector<16x128xf32>
    %174 = arith.addf %172, %173 : vector<16x128xf32>
    %175 = vector.broadcast %107 : vector<1x128xf32> to vector<16x128xf32>
    %176 = arith.mulf %174, %175 : vector<16x128xf32>
    %177 = vector.broadcast %110 : vector<1x128xf32> to vector<16x128xf32>
    %178 = arith.addf %176, %177 : vector<16x128xf32>
    %cst_73 = arith.constant 0.000000e+00 : f32
    %179 = vector.broadcast %cst_73 : f32 to vector<16x128xf32>
    %180 = arith.maximumf %178, %179 : vector<16x128xf32>
    %181 = arith.addf %92, %180 : vector<16x128xf32>
    %c2 = arith.constant 2 : index
    %c0_74 = arith.constant 0 : index
    %182 = vector.load %arg4[%c2, %c0_74] : memref<3x128xf32, #tpu.memory_space<vmem>>, vector<1x128xf32>
    %183 = vector.shape_cast %182 : vector<1x128xf32> to vector<128xf32>
    %184 = vector.shape_cast %183 : vector<128xf32> to vector<1x128xf32>
    %c2_75 = arith.constant 2 : index
    %c0_76 = arith.constant 0 : index
    %185 = vector.load %arg5[%c2_75, %c0_76] : memref<3x128xf32, #tpu.memory_space<vmem>>, vector<1x128xf32>
    %186 = vector.shape_cast %185 : vector<1x128xf32> to vector<128xf32>
    %187 = vector.shape_cast %186 : vector<128xf32> to vector<1x128xf32>
    %c2_77 = arith.constant 2 : index
    %c0_78 = arith.constant 0 : index
    %188 = vector.load %arg6[%c2_77, %c0_78] : memref<3x128xf32, #tpu.memory_space<vmem>>, vector<1x128xf32>
    %189 = vector.shape_cast %188 : vector<1x128xf32> to vector<128xf32>
    %190 = vector.shape_cast %189 : vector<128xf32> to vector<1x128xf32>
    %c2_79 = arith.constant 2 : index
    %c0_80 = arith.constant 0 : index
    %191 = vector.load %arg8[%c2_79, %c0_80] : memref<3x128xf32, #tpu.memory_space<vmem>>, vector<1x128xf32>
    %192 = vector.shape_cast %191 : vector<1x128xf32> to vector<128xf32>
    %193 = vector.shape_cast %192 : vector<128xf32> to vector<1x128xf32>
    %c2_81 = arith.constant 2 : index
    %c0_82 = arith.constant 0 : index
    %194 = vector.load %arg9[%c2_81, %c0_82] : memref<3x128xf32, #tpu.memory_space<vmem>>, vector<1x128xf32>
    %195 = vector.shape_cast %194 : vector<1x128xf32> to vector<128xf32>
    %196 = vector.shape_cast %195 : vector<128xf32> to vector<1x128xf32>
    %c2_83 = arith.constant 2 : index
    %c0_84 = arith.constant 0 : index
    %197 = vector.load %arg10[%c2_83, %c0_84] : memref<3x128xf32, #tpu.memory_space<vmem>>, vector<1x128xf32>
    %198 = vector.shape_cast %197 : vector<1x128xf32> to vector<128xf32>
    %199 = vector.shape_cast %198 : vector<128xf32> to vector<1x128xf32>
    %200 = arith.truncf %181 : vector<16x128xf32> to vector<16x128xbf16>
    %c2_85 = arith.constant 2 : index
    %c0_86 = arith.constant 0 : index
    %c0_87 = arith.constant 0 : index
    %201 = vector.load %arg3[%c2_85, %c0_86, %c0_87] : memref<3x128x128xbf16, #tpu.memory_space<vmem>>, vector<1x128x128xbf16>
    %202 = vector.shape_cast %201 : vector<1x128x128xbf16> to vector<128x128xbf16>
    %cst_88 = arith.constant dense<0.000000e+00> : vector<16x128xf32>
    %203 = tpu.matmul %200, %202, %cst_88 {dimension_numbers = #tpu.dot_dimension_numbers<[1], [0], [0], [1], [0, 0, 1, 1], [], []>} : vector<16x128xbf16>, vector<128x128xbf16>, vector<16x128xf32> -> vector<16x128xf32>
    %204 = vector.broadcast %184 : vector<1x128xf32> to vector<16x128xf32>
    %205 = arith.addf %203, %204 : vector<16x128xf32>
    %cst_89 = arith.constant dense<0.000000e+00> : vector<16xf32>
    %206 = vector.multi_reduction <add>, %205, %cst_89 [1] : vector<16x128xf32> to vector<16xf32>
    %207 = vector.shape_cast %206 : vector<16xf32> to vector<16x1xf32>
    %cst_90 = arith.constant 1.280000e+02 : f32
    %208 = vector.broadcast %cst_90 : f32 to vector<16x1xf32>
    %209 = arith.divf %207, %208 : vector<16x1xf32>
    %210 = arith.mulf %205, %205 : vector<16x128xf32>
    %cst_91 = arith.constant dense<0.000000e+00> : vector<16xf32>
    %211 = vector.multi_reduction <add>, %210, %cst_91 [1] : vector<16x128xf32> to vector<16xf32>
    %212 = vector.shape_cast %211 : vector<16xf32> to vector<16x1xf32>
    %cst_92 = arith.constant 1.280000e+02 : f32
    %213 = vector.broadcast %cst_92 : f32 to vector<16x1xf32>
    %214 = arith.divf %212, %213 : vector<16x1xf32>
    %215 = arith.mulf %209, %209 : vector<16x1xf32>
    %216 = arith.subf %214, %215 : vector<16x1xf32>
    %cst_93 = arith.constant 0.000000e+00 : f32
    %217 = vector.broadcast %cst_93 : f32 to vector<16x1xf32>
    %218 = arith.maximumf %216, %217 : vector<16x1xf32>
    %cst_94 = arith.constant 9.99999974E-6 : f32
    %219 = vector.broadcast %cst_94 : f32 to vector<16x1xf32>
    %220 = arith.addf %218, %219 : vector<16x1xf32>
    %221 = math.rsqrt %220 : vector<16x1xf32>
    %cst_95 = arith.constant 0.000000e+00 : f32
    %222 = vector.broadcast %cst_95 : f32 to vector<16x1xf32>
    %223 = arith.subf %222, %209 : vector<16x1xf32>
    %224 = arith.mulf %223, %221 : vector<16x1xf32>
    %225 = vector.broadcast %221 : vector<16x1xf32> to vector<16x128xf32>
    %226 = arith.mulf %205, %225 : vector<16x128xf32>
    %227 = vector.broadcast %224 : vector<16x1xf32> to vector<16x128xf32>
    %228 = arith.addf %226, %227 : vector<16x128xf32>
    %229 = vector.broadcast %187 : vector<1x128xf32> to vector<16x128xf32>
    %230 = arith.mulf %228, %229 : vector<16x128xf32>
    %231 = vector.broadcast %190 : vector<1x128xf32> to vector<16x128xf32>
    %232 = arith.addf %230, %231 : vector<16x128xf32>
    %cst_96 = arith.constant 0.000000e+00 : f32
    %233 = vector.broadcast %cst_96 : f32 to vector<16x128xf32>
    %234 = arith.maximumf %232, %233 : vector<16x128xf32>
    %235 = arith.truncf %234 : vector<16x128xf32> to vector<16x128xbf16>
    %c2_97 = arith.constant 2 : index
    %c0_98 = arith.constant 0 : index
    %c0_99 = arith.constant 0 : index
    %236 = vector.load %arg7[%c2_97, %c0_98, %c0_99] : memref<3x128x128xbf16, #tpu.memory_space<vmem>>, vector<1x128x128xbf16>
    %237 = vector.shape_cast %236 : vector<1x128x128xbf16> to vector<128x128xbf16>
    %cst_100 = arith.constant dense<0.000000e+00> : vector<16x128xf32>
    %238 = tpu.matmul %235, %237, %cst_100 {dimension_numbers = #tpu.dot_dimension_numbers<[1], [0], [0], [1], [0, 0, 1, 1], [], []>} : vector<16x128xbf16>, vector<128x128xbf16>, vector<16x128xf32> -> vector<16x128xf32>
    %239 = vector.broadcast %193 : vector<1x128xf32> to vector<16x128xf32>
    %240 = arith.addf %238, %239 : vector<16x128xf32>
    %cst_101 = arith.constant dense<0.000000e+00> : vector<16xf32>
    %241 = vector.multi_reduction <add>, %240, %cst_101 [1] : vector<16x128xf32> to vector<16xf32>
    %242 = vector.shape_cast %241 : vector<16xf32> to vector<16x1xf32>
    %cst_102 = arith.constant 1.280000e+02 : f32
    %243 = vector.broadcast %cst_102 : f32 to vector<16x1xf32>
    %244 = arith.divf %242, %243 : vector<16x1xf32>
    %245 = arith.mulf %240, %240 : vector<16x128xf32>
    %cst_103 = arith.constant dense<0.000000e+00> : vector<16xf32>
    %246 = vector.multi_reduction <add>, %245, %cst_103 [1] : vector<16x128xf32> to vector<16xf32>
    %247 = vector.shape_cast %246 : vector<16xf32> to vector<16x1xf32>
    %cst_104 = arith.constant 1.280000e+02 : f32
    %248 = vector.broadcast %cst_104 : f32 to vector<16x1xf32>
    %249 = arith.divf %247, %248 : vector<16x1xf32>
    %250 = arith.mulf %244, %244 : vector<16x1xf32>
    %251 = arith.subf %249, %250 : vector<16x1xf32>
    %cst_105 = arith.constant 0.000000e+00 : f32
    %252 = vector.broadcast %cst_105 : f32 to vector<16x1xf32>
    %253 = arith.maximumf %251, %252 : vector<16x1xf32>
    %cst_106 = arith.constant 9.99999974E-6 : f32
    %254 = vector.broadcast %cst_106 : f32 to vector<16x1xf32>
    %255 = arith.addf %253, %254 : vector<16x1xf32>
    %256 = math.rsqrt %255 : vector<16x1xf32>
    %cst_107 = arith.constant 0.000000e+00 : f32
    %257 = vector.broadcast %cst_107 : f32 to vector<16x1xf32>
    %258 = arith.subf %257, %244 : vector<16x1xf32>
    %259 = arith.mulf %258, %256 : vector<16x1xf32>
    %260 = vector.broadcast %256 : vector<16x1xf32> to vector<16x128xf32>
    %261 = arith.mulf %240, %260 : vector<16x128xf32>
    %262 = vector.broadcast %259 : vector<16x1xf32> to vector<16x128xf32>
    %263 = arith.addf %261, %262 : vector<16x128xf32>
    %264 = vector.broadcast %196 : vector<1x128xf32> to vector<16x128xf32>
    %265 = arith.mulf %263, %264 : vector<16x128xf32>
    %266 = vector.broadcast %199 : vector<1x128xf32> to vector<16x128xf32>
    %267 = arith.addf %265, %266 : vector<16x128xf32>
    %cst_108 = arith.constant 0.000000e+00 : f32
    %268 = vector.broadcast %cst_108 : f32 to vector<16x128xf32>
    %269 = arith.maximumf %267, %268 : vector<16x128xf32>
    %270 = arith.addf %181, %269 : vector<16x128xf32>
    %271 = arith.truncf %270 : vector<16x128xf32> to vector<16x128xbf16>
    %c0_109 = arith.constant 0 : index
    %c0_110 = arith.constant 0 : index
    %272 = vector.load %arg11[%c0_109, %c0_110] : memref<128x128xbf16, #tpu.memory_space<vmem>>, vector<128x128xbf16>
    %cst_111 = arith.constant dense<0.000000e+00> : vector<16x128xf32>
    %273 = tpu.matmul %271, %272, %cst_111 {dimension_numbers = #tpu.dot_dimension_numbers<[1], [0], [0], [1], [0, 0, 1, 1], [], []>} : vector<16x128xbf16>, vector<128x128xbf16>, vector<16x128xf32> -> vector<16x128xf32>
    %274 = arith.truncf %273 : vector<16x128xf32> to vector<16x128xbf16>
    %c0_112 = arith.constant 0 : index
    %c0_113 = arith.constant 0 : index
    %275 = vector.load %arg12[%c0_112, %c0_113] : memref<16x128xbf16, #tpu.memory_space<vmem>>, vector<16x128xbf16>
    tpu.vector_store %arg12[%c0_112, %c0_113], %274 {strides = array<i32>} : memref<16x128xbf16, #tpu.memory_space<vmem>>, vector<16x128xbf16>,
    return
  }
  func.func @transform_0(%arg0: i32) -> (i32, i32) {
    %c0_i32 = arith.constant 0 : i32
    %c0_i32_0 = arith.constant 0 : i32
    return %arg0, %c0_i32 : i32, i32
  }
  func.func @transform_1(%arg0: i32) -> (i32, i32) {
    %c0_i32 = arith.constant 0 : i32
    %c0_i32_0 = arith.constant 0 : i32
    %c0_i32_1 = arith.constant 0 : i32
    return %c0_i32, %c0_i32_0 : i32, i32
  }
  func.func @transform_2(%arg0: i32) -> (i32, i32, i32) {
    %c0_i32 = arith.constant 0 : i32
    %c0_i32_0 = arith.constant 0 : i32
    %c0_i32_1 = arith.constant 0 : i32
    %c0_i32_2 = arith.constant 0 : i32
    return %c0_i32, %c0_i32_0, %c0_i32_1 : i32, i32, i32
  }
  func.func @transform_3(%arg0: i32) -> (i32, i32) {
    %c0_i32 = arith.constant 0 : i32
    %c0_i32_0 = arith.constant 0 : i32
    %c0_i32_1 = arith.constant 0 : i32
    return %c0_i32, %c0_i32_0 : i32, i32
  }
  func.func @transform_4(%arg0: i32) -> (i32, i32) {
    %c0_i32 = arith.constant 0 : i32
    %c0_i32_0 = arith.constant 0 : i32
    %c0_i32_1 = arith.constant 0 : i32
    return %c0_i32, %c0_i32_0 : i32, i32
  }
  func.func @transform_5(%arg0: i32) -> (i32, i32) {
    %c0_i32 = arith.constant 0 : i32
    %c0_i32_0 = arith.constant 0 : i32
    %c0_i32_1 = arith.constant 0 : i32
    return %c0_i32, %c0_i32_0 : i32, i32
  }
  func.func @transform_6(%arg0: i32) -> (i32, i32, i32) {
    %c0_i32 = arith.constant 0 : i32
    %c0_i32_0 = arith.constant 0 : i32
    %c0_i32_1 = arith.constant 0 : i32
    %c0_i32_2 = arith.constant 0 : i32
    return %c0_i32, %c0_i32_0, %c0_i32_1 : i32, i32, i32
  }
  func.func @transform_7(%arg0: i32) -> (i32, i32) {
    %c0_i32 = arith.constant 0 : i32
    %c0_i32_0 = arith.constant 0 : i32
    %c0_i32_1 = arith.constant 0 : i32
    return %c0_i32, %c0_i32_0 : i32, i32
  }
  func.func @transform_8(%arg0: i32) -> (i32, i32) {
    %c0_i32 = arith.constant 0 : i32
    %c0_i32_0 = arith.constant 0 : i32
    %c0_i32_1 = arith.constant 0 : i32
    return %c0_i32, %c0_i32_0 : i32, i32
  }
  func.func @transform_9(%arg0: i32) -> (i32, i32) {
    %c0_i32 = arith.constant 0 : i32
    %c0_i32_0 = arith.constant 0 : i32
    %c0_i32_1 = arith.constant 0 : i32
    return %c0_i32, %c0_i32_0 : i32, i32
  }
  func.func @transform_10(%arg0: i32) -> (i32, i32) {
    %c0_i32 = arith.constant 0 : i32
    %c0_i32_0 = arith.constant 0 : i32
    %c0_i32_1 = arith.constant 0 : i32
    return %c0_i32, %c0_i32_0 : i32, i32
  }
  func.func @transform_11(%arg0: i32) -> (i32, i32) {
    %c0_i32 = arith.constant 0 : i32
    %c0_i32_0 = arith.constant 0 : i32
    return %arg0, %c0_i32 : i32, i32
  }
}

</mosaic_0001>

<bundles_post_ra>
// kernel: mlp_classifier_deep_residual.1
= control target key start
LH: loop header
LB: loop body
LE: loop exit
PB: predicated region body
PF: predicated region fallthrough
CT: control target
= control target key end

     0   :  { %vm2244_vm0 = vmmov 0   ;;  %s2804_s1 = inlined_call_operand.vmem [shape: bf16[768,128], index: 1, kind: input, shape index: {}]   ;;  %s2805_s0 = inlined_call_operand.vmem [shape: f32[16,768], index: 0, kind: input, shape index: {}]   ;;  %s2806_s2 = inlined_call_operand.vmem [shape: bf16[3,128,128], index: 2, kind: input, shape index: {}]   ;;  %s2807_s3 = inlined_call_operand.vmem [shape: f32[3,128], index: 3, kind: input, shape index: {}]   ;;  %s2808_s6 = inlined_call_operand.vmem [shape: bf16[3,128,128], index: 6, kind: input, shape index: {}]   ;;  %s2809_s4 = inlined_call_operand.vmem [shape: f32[3,128], index: 4, kind: input, shape index: {}]   ;;  %s2810_s5 = inlined_call_operand.vmem [shape: f32[3,128], index: 5, kind: input, shape index: {}]   ;;  %s2811_s7 = inlined_call_operand.vmem [shape: f32[3,128], index: 7, kind: input, shape index: {}]   ;;  %s2812_s8 = inlined_call_operand.vmem [shape: f32[3,128], index: 8, kind: input, shape index: {}]   ;;  %s2813_s9 = inlined_call_operand.vmem [shape: f32[3,128], index: 9, kind: input, shape index: {}]   ;;  %s2814_s10 = inlined_call_operand.vmem [shape: bf16[128,128], index: 10, kind: input, shape index: {}]   ;;  %s2815_s11 = inlined_call_operand.vmem [shape: bf16[16,128], index: 11, kind: output, shape index: {}]  }
   0x1   :  { %v2115_v0 = vld [vmem:[%s2804_s1 + $0x40] sm:$0xff]   ;;  %v2119_v4 = vld [vmem:[%s2804_s1 + $0x48] sm:$0xff]   ;;  %v2123_v8 = vld [vmem:[%s2804_s1 + $0x50] sm:$0xff]  }
   0x2   :  { %v2116_v1 = vld [vmem:[%s2804_s1 + $0xc0] sm:$0xff]   ;;  %1844 = vmatprep.subr.bf16.mxu0 %v2115_v0  ;;  %v2120_v5 = vld [vmem:[%s2804_s1 + $0xc8] sm:$0xff]   ;;  %v2124_v9 = vld [vmem:[%s2804_s1 + $0xd0] sm:$0xff]  }
   0x3   :  { %v2117_v2 = vld [vmem:[%s2804_s1] sm:$0xff]   ;;  %1866 = vmatprep.subr.bf16.mxu1 %v2116_v1  ;;  %v2121_v6 = vld [vmem:[%s2804_s1 + $0x8] sm:$0xff]   ;;  %v2125_v10 = vld [vmem:[%s2804_s1 + $0x10] sm:$0xff]  }
   0x4   :  { %v2118_v3 = vld [vmem:[%s2804_s1 + $0x80] sm:$0xff]   ;;  %1845 = vmatpush3.bf16.msra.mxu0 %v2117_v2  ;;  %v2122_v7 = vld [vmem:[%s2804_s1 + $0x88] sm:$0xff]   ;;  %v2126_v11 = vld [vmem:[%s2804_s1 + $0x90] sm:$0xff]   ;;  %v2243_v2 = vmov 0.0  }
   0x5   :  { %1867 = vmatpush3.bf16.msra.mxu1 %v2118_v3  ;;  %1846 = vmatprep.subr.bf16.mxu0 %v2119_v4  ;;  %v2127_v12 = vld [vmem:[%s2804_s1 + $0x58] sm:$0xff]   ;;  %v2131_v16 = vld [vmem:[%s2804_s1 + $0x60] sm:$0xff]   ;;  %v2135_v20 = vld [vmem:[%s2804_s1 + $0x68] sm:$0xff]  }
   0x6   :  { %1868 = vmatprep.subr.bf16.mxu1 %v2120_v5  ;;  %v2128_v13 = vld [vmem:[%s2804_s1 + $0xd8] sm:$0xff]   ;;  %v2132_v17 = vld [vmem:[%s2804_s1 + $0xe0] sm:$0xff]   ;;  %v2136_v21 = vld [vmem:[%s2804_s1 + $0xe8] sm:$0xff]  }
   0x7   :  { %v2129_v14 = vld [vmem:[%s2804_s1 + $0x18] sm:$0xff]   ;;  %v2133_v18 = vld [vmem:[%s2804_s1 + $0x20] sm:$0xff]   ;;  %v2137_v22 = vld [vmem:[%s2804_s1 + $0x28] sm:$0xff]  }
   0x8   :  { %1847 = vmatpush3.bf16.msra.mxu0 %v2121_v6  ;;  %v2130_v15 = vld [vmem:[%s2804_s1 + $0x98] sm:$0xff]   ;;  %v2134_v19 = vld [vmem:[%s2804_s1 + $0xa0] sm:$0xff]   ;;  %v2138_v23 = vld [vmem:[%s2804_s1 + $0xa8] sm:$0xff]  }
   0x9   :  { %1869 = vmatpush3.bf16.msra.mxu1 %v2122_v7  ;;  %1848 = vmatprep.subr.bf16.mxu0 %v2123_v8  ;;  %v2139_v24 = vld [vmem:[%s2804_s1 + $0x70] sm:$0xff]   ;;  %v2143_v28 = vld [vmem:[%s2804_s1 + $0x78] sm:$0xff]   ;;  %v40_v32 = vld [vmem:[%s2805_s0 + $0x8] sm:$0xff] }
   0xa   :  { %1870 = vmatprep.subr.bf16.mxu1 %v2124_v9  ;;  %v2140_v25 = vld [vmem:[%s2804_s1 + $0xf0] sm:$0xff]   ;;  %v2144_v29 = vld [vmem:[%s2804_s1 + $0xf8] sm:$0xff]   ;;  %v48_v36 = vld [vmem:[%s2805_s0 + $0x48] sm:$0xff] }
   0xb   :  { %v2141_v26 = vld [vmem:[%s2804_s1 + $0x30] sm:$0xff]   ;;  %v2145_v30 = vld [vmem:[%s2804_s1 + $0x38] sm:$0xff]   ;;  %v39_v37 = vld [vmem:[%s2805_s0] sm:$0xff] }
   0xc   :  { %1849 = vmatpush3.bf16.msra.mxu0 %v2125_v10  ;;  %v2142_v27 = vld [vmem:[%s2804_s1 + $0xb0] sm:$0xff]   ;;  %v2146_v31 = vld [vmem:[%s2804_s1 + $0xb8] sm:$0xff]   ;;  %v47_v42 = vld [vmem:[%s2805_s0 + $0x40] sm:$0xff] }
   0xd   :  { %1871 = vmatpush3.bf16.msra.mxu1 %v2126_v11  ;;  %1850 = vmatprep.subr.bf16.mxu0 %v2127_v12  ;;  %v46_v33 = vld [vmem:[%s2805_s0 + $0x38] sm:$0xff]  ;;  %v45_v38 = vld [vmem:[%s2805_s0 + $0x30] sm:$0xff]  ;;  %v2147_v44 = vld [vmem:[%s2804_s1 + $0x140] sm:$0xff]  }
   0xe   :  { %1872 = vmatprep.subr.bf16.mxu1 %v2128_v13  ;;  %v42_v34 = vld [vmem:[%s2805_s0 + $0x18] sm:$0xff]  ;;  %v52_v35 = vpack.c.bf16 %v46_v33, %v40_v32  ;;  %v51_v40 = vpack.c.bf16 %v45_v38, %v39_v37  ;;  %v41_v41 = vld [vmem:[%s2805_s0 + $0x10] sm:$0xff]  ;;  %v2148_v45 = vld [vmem:[%s2804_s1 + $0x100] sm:$0xff]  }
   0xf   :  { %v54_v39 = vpack.c.bf16 %v48_v36, %v42_v34  ;;  %v53_v43 = vpack.c.bf16 %v47_v42, %v41_v41  ;;  %v2149_v46 = vld [vmem:[%s2804_s1 + $0x148] sm:$0xff]   ;;  %v2151_v48 = vld [vmem:[%s2804_s1 + $0x150] sm:$0xff]   ;;  %v2153_v50 = vld [vmem:[%s2804_s1 + $0x158] sm:$0xff]  }
  0x10   :  { %1851 = vmatpush3.bf16.msra.mxu0 %v2129_v14  ;;  %473 = vmatprep.mubr.bf16.mxu0 %v52_v35  ;;  %v2150_v47 = vld [vmem:[%s2804_s1 + $0x108] sm:$0xff]   ;;  %v2152_v49 = vld [vmem:[%s2804_s1 + $0x110] sm:$0xff]   ;;  %v2154_v51 = vld [vmem:[%s2804_s1 + $0x118] sm:$0xff]  }
  0x11   :  { %1873 = vmatpush3.bf16.msra.mxu1 %v2130_v15  ;;  %1852 = vmatprep.subr.bf16.mxu0 %v2131_v16  ;;  %v2155_v52 = vld [vmem:[%s2804_s1 + $0x160] sm:$0xff]   ;;  %v44_v54 = vld [vmem:[%s2805_s0 + $0x28] sm:$0xff]  ;;  %v50_v56 = vld [vmem:[%s2805_s0 + $0x58] sm:$0xff] }
  0x12   :  { %1874 = vmatprep.subr.bf16.mxu1 %v2132_v17  ;;  %514 = vmatprep.mubr.bf16.mxu1 %v54_v39  ;;  %v2156_v53 = vld [vmem:[%s2804_s1 + $0x120] sm:$0xff]   ;;  %v2157_v55 = vld [vmem:[%s2804_s1 + $0x168] sm:$0xff]   ;;  %v56_v57 = vpack.c.bf16 %v50_v56, %v44_v54  ;;  %v2159_v59 = vld [vmem:[%s2804_s1 + $0x170] sm:$0xff]  }
  0x13   :  { %v2158_v58 = vld [vmem:[%s2804_s1 + $0x128] sm:$0xff]   ;;  %v2160_v60 = vld [vmem:[%s2804_s1 + $0x130] sm:$0xff]   ;;  %v2161_v61 = vld [vmem:[%s2804_s1 + $0x178] sm:$0xff]  }
  0x14   :  { %1853 = vmatpush3.bf16.msra.mxu0 %v2133_v18  ;;  %v2162_v62 = vld [vmem:[%s2804_s1 + $0x138] sm:$0xff]   ;;  %v43_v63 = vld [vmem:[%s2805_s0 + $0x20] sm:$0xff]  ;;  %v49_v0 = vld [vmem:[%s2805_s0 + $0x50] sm:$0xff] }
  0x15   :  { %1875 = vmatpush3.bf16.msra.mxu1 %v2134_v19  ;;  %1854 = vmatprep.subr.bf16.mxu0 %v2135_v20  ;;  %v55_v1 = vpack.c.bf16 %v49_v0, %v43_v63  ;;  %v2163_v3 = vld [vmem:[%s2806_s2] sm:$0xff]   ;;  %v2164_v4 = vld [vmem:[%s2806_s2 + $0x8] sm:$0xff]   ;;  %v2165_v5 = vld [vmem:[%s2806_s2 + $0x10] sm:$0xff]  }
  0x16   :  { %1876 = vmatprep.subr.bf16.mxu1 %v2136_v21  ;;  %v2166_v6 = vld [vmem:[%s2806_s2 + $0x18] sm:$0xff]   ;;  %v2167_v7 = vld [vmem:[%s2806_s2 + $0x20] sm:$0xff]   ;;  %v2168_v8 = vld [vmem:[%s2806_s2 + $0x28] sm:$0xff]  }
  0x17   :  { %v2169_v9 = vld [vmem:[%s2806_s2 + $0x30] sm:$0xff]   ;;  %v2170_v10 = vld [vmem:[%s2806_s2 + $0x38] sm:$0xff]   ;;  %v1697_v34 = vld [vmem:[%s2807_s3] ss:$0 sm:$0xff] }
  0x18   :  { %1855 = vmatpush3.bf16.msra.mxu0 %v2137_v22 }
  0x19   :  { %1877 = vmatpush3.bf16.msra.mxu1 %v2138_v23  ;;  %1856 = vmatprep.subr.bf16.mxu0 %v2139_v24 }
  0x1a   :  { %1878 = vmatprep.subr.bf16.mxu1 %v2140_v25 }
  0x1c   :  { %1857 = vmatpush3.bf16.msra.mxu0 %v2141_v26 }
  0x1d   :  { %1879 = vmatpush3.bf16.msra.mxu1 %v2142_v27  ;;  %1858 = vmatprep.subr.bf16.mxu0 %v2143_v28 }
  0x1e   :  { %1880 = vmatprep.subr.bf16.mxu1 %v2144_v29 }
  0x20   :  { %1859 = vmatpush3.bf16.msra.mxu0 %v2145_v30 }
  0x21   :  { %1881 = vmatpush3.bf16.msra.mxu1 %v2146_v31  ;;  %1888 = vmatprep.subr.bf16.mxu0 %v2147_v44  ;;  %v2172_v44 = vld [vmem:[%s2808_s6 + $0x8] sm:$0xff]  }
  0x22   :  { %1973 = vmatprep.subr.bf16.mxu1 %v2243_v2 }
  0x23   :  { %474 = vmatmul.mubr.bf16.vlgmr.msra.gmra.mrb[0].mxu0 %v51_v40 }
  0x24   :  { %515 = vmatmul.mubr.bf16.vlgmr.msra.gmra.mrb[0].mxu1 %v53_v43  ;;  %1889 = vmatpush3.bf16.msra.mxu0 %v2148_v45  ;;  %v2171_v43 = vld [vmem:[%s2808_s6] sm:$0xff]   ;;  %v2173_v45 = vld [vmem:[%s2808_s6 + $0x10] sm:$0xff]  }
  0x25   :  { %1890 = vmatprep.subr.bf16.mxu0 %v2149_v46  ;;  %555 = vmatprep.mubr.bf16.mxu0 %v56_v57  ;;  %v2174_v46 = vld [vmem:[%s2808_s6 + $0x18] sm:$0xff]  }
  0x26   :  { %1974 = vmatpush3.bf16.msra.mxu1 %v2163_v3  ;;  %1989 = vmatprep.mubr.msk.bf16.mxu1 %vm2244_vm0, %v2243_v2 }
  0x27   :  { %1975 = vmatprep.subr.bf16.mxu1 %v2243_v2 }
  0x28   :  { %1891 = vmatpush3.bf16.msra.mxu0 %v2150_v47  ;;  %v2175_v47 = vld [vmem:[%s2808_s6 + $0x20] sm:$0xff]  }
  0x29   :  { %1892 = vmatprep.subr.bf16.mxu0 %v2151_v48  ;;  %v2176_v48 = vld [vmem:[%s2808_s6 + $0x28] sm:$0xff]  }
  0x2a   :  { %1976 = vmatpush3.bf16.msra.mxu1 %v2164_v4 }
  0x2b   :  { %1977 = vmatprep.subr.bf16.mxu1 %v2243_v2 }
  0x2c   :  { %1893 = vmatpush3.bf16.msra.mxu0 %v2152_v49  ;;  %v2177_v49 = vld [vmem:[%s2808_s6 + $0x30] sm:$0xff]  }
  0x2d   :  { %1894 = vmatprep.subr.bf16.mxu0 %v2153_v50  ;;  %v2178_v50 = vld [vmem:[%s2808_s6 + $0x38] sm:$0xff]  }
  0x2e   :  { %1978 = vmatpush3.bf16.msra.mxu1 %v2165_v5 }
  0x2f   :  { %1979 = vmatprep.subr.bf16.mxu1 %v2243_v2 }
  0x30   :  { %1895 = vmatpush3.bf16.msra.mxu0 %v2154_v51 }
  0x31   :  { %1896 = vmatprep.subr.bf16.mxu0 %v2155_v52 }
  0x32   :  { %1980 = vmatpush3.bf16.msra.mxu1 %v2166_v6 }
  0x33   :  { %1981 = vmatprep.subr.bf16.mxu1 %v2243_v2 }
  0x34   :  { %1897 = vmatpush3.bf16.msra.mxu0 %v2156_v53 }
  0x35   :  { %1898 = vmatprep.subr.bf16.mxu0 %v2157_v55 }
  0x36   :  { %1982 = vmatpush3.bf16.msra.mxu1 %v2167_v7 }
  0x37   :  { %1983 = vmatprep.subr.bf16.mxu1 %v2243_v2 }
  0x38   :  { %1899 = vmatpush3.bf16.msra.mxu0 %v2158_v58 }
  0x39   :  { %1900 = vmatprep.subr.bf16.mxu0 %v2159_v59 }
  0x3a   :  { %1984 = vmatpush3.bf16.msra.mxu1 %v2168_v8  ;;  %v1706_v8 = vld [vmem:[%s2809_s4] ss:$0 sm:$0xff] }
  0x3b   :  { %1985 = vmatprep.subr.bf16.mxu1 %v2243_v2 }
  0x3c   :  { %1901 = vmatpush3.bf16.msra.mxu0 %v2160_v60 }
  0x3d   :  { %1902 = vmatprep.subr.bf16.mxu0 %v2161_v61 }
  0x3e   :  { %1986 = vmatpush3.bf16.msra.mxu1 %v2169_v9 }
  0x3f   :  { %1987 = vmatprep.subr.bf16.mxu1 %v2243_v2 }
  0x40   :  { %1903 = vmatpush3.bf16.msra.mxu0 %v2162_v62 }
  0x41   :  { %1993 = vmatprep.subr.bf16.mxu0 %v2243_v2 }
  0x42   :  { %1988 = vmatpush3.bf16.msra.mxu1 %v2170_v10 }
  0x43   :  { %556 = vmatmul.mubr.bf16.vlgmr.msra.gmra.mrb[4].mxu0 %v55_v1  ;;  %2013 = vmatprep.subr.bf16.mxu1 %v2243_v2 }
  0x44   :  { %2009 = vmatprep.mubr.msk.bf16.mxu0 %vm2244_vm0, %v2243_v2  ;;  %1994 = vmatpush3.bf16.msra.mxu0 %v2171_v43 }
  0x45   :  { %1995 = vmatprep.subr.bf16.mxu0 %v2243_v2 }
  0x48   :  { %1996 = vmatpush3.bf16.msra.mxu0 %v2172_v44 }
  0x49   :  { %1997 = vmatprep.subr.bf16.mxu0 %v2243_v2 }
  0x4c   :  { %1998 = vmatpush3.bf16.msra.mxu0 %v2173_v45 }
  0x4d   :  { %1999 = vmatprep.subr.bf16.mxu0 %v2243_v2 }
  0x50   :  { %2000 = vmatpush3.bf16.msra.mxu0 %v2174_v46 }
  0x51   :  { %2001 = vmatprep.subr.bf16.mxu0 %v2243_v2 }
  0x54   :  { %2002 = vmatpush3.bf16.msra.mxu0 %v2175_v47 }
  0x55   :  { %2003 = vmatprep.subr.bf16.mxu0 %v2243_v2 }
  0x58   :  { %2004 = vmatpush3.bf16.msra.mxu0 %v2176_v48 }
  0x59   :  { %2005 = vmatprep.subr.bf16.mxu0 %v2243_v2 }
  0x5c   :  { %2006 = vmatpush3.bf16.msra.mxu0 %v2177_v49 }
  0x5d   :  { %2007 = vmatprep.subr.bf16.mxu0 %v2243_v2 }
  0x60   :  { %2008 = vmatpush3.bf16.msra.mxu0 %v2178_v50 }
  0x61   :  { %2033 = vmatprep.subr.bf16.mxu0 %v2243_v2 }
  0xf6   :  { %v1860_v11 = vpop.f32.mrb[0].mxu0 }
  0xf7   :  { %v1882_v12 = vpop.f32.mrb[0].mxu1  ;;  %v1861_v13 = vpop.f32.mrb[1].mxu0 }
  0xf8   :  { %v1862_v14 = vadd.f32 %v1861_v13, %v1860_v11  ;;  %v1883_v15 = vpop.f32.mrb[1].mxu1  ;;  %v1863_v16 = vpop.f32.mrb[2].mxu0 }
  0xf9   :  { %v1884_v17 = vadd.f32 %v1883_v15, %v1882_v12  ;;  %v1885_v18 = vpop.f32.mrb[2].mxu1  ;;  %v1864_v19 = vpop.f32.mrb[3].mxu0  ;;  %v1707_v15 = vld [vmem:[%s2810_s5] ss:$0 sm:$0xff] }
  0xfa   :  { %v1865_v20 = vadd.f32 %v1864_v19, %v1863_v16  ;;  %v1886_v21 = vpop.f32.mrb[3].mxu1 }
  0xfb   :  { %v517_v22 = vadd.f32 %v1884_v17, %v1862_v14  ;;  %v1887_v23 = vadd.f32 %v1886_v21, %v1885_v18 }
  0xfd   :  { %v520_v24 = vadd.f32 %v1887_v23, %v1865_v20  ;;  %v1708_v23 = vld [vmem:[%s2811_s7] ss:$0 sm:$0xff] }
 0x116   :  { %v1904_v25 = vpop.f32.mrb[4].mxu0 }
 0x117   :  { %v1905_v26 = vpop.f32.mrb[5].mxu0 }
 0x118   :  { %v1906_v27 = vadd.f32 %v1905_v26, %v1904_v25  ;;  %v1907_v28 = vpop.f32.mrb[6].mxu0 }
 0x119   :  { %v1908_v29 = vpop.f32.mrb[7].mxu0 }
 0x11a   :  { %v2523_v30 = vadd.f32 %v1906_v27, %v517_v22  ;;  %v1909_v31 = vadd.f32 %v1908_v29, %v1907_v28 }
 0x11c   :  { %v2525_v32 = vadd.f32 %v1909_v31, %v520_v24 }
 0x11e   :  { %v570_v33 = vpack.c.bf16 %v2525_v32, %v2523_v30 }
 0x120   :  { %1990 = vmatmul.mubr.bf16.vlgmr.msra.gmra.mrb[4].mxu1 %v570_v33 }
 0x121   :  { %2029 = vmatprep.mubr.msk.bf16.mxu1 %vm2244_vm0, %v2243_v2 }
 0x1f3   :  { %v673_v35 = vpop.f32.mrb[4].mxu1 }
 0x1f4   :  { %v674_v36 = vadd.f32 %v1697_v34, %v673_v35  ;;  %v1991_v37 = vpop.f32.mrb[5].mxu1  ;;  %v2180_v35 = vld [vmem:[%s2806_s2 + $0x48] sm:$0xff]  }
 0x1f5   :  { %v676_v38 = vpop.f32.mrb[6].mxu1  ;;  %v2182_v37 = vld [vmem:[%s2806_s2 + $0x58] sm:$0xff]  }
 0x1f6   :  { %v677_v39 = vadd.f32 %v1697_v34, %v676_v38  ;;  %680 = vadd.xlane.f32.xlu0 %v674_v36  ;;  %v1992_v40 = vpop.f32.mrb[7].mxu1  ;;  %v687_v41 = vmul.f32 %v674_v36, %v674_v36  ;;  %v2179_v34 = vld [vmem:[%s2806_s2 + $0x40] sm:$0xff]  }
 0x1f7   :  { %2014 = vmatpush3.bf16.msra.mxu1 %v2179_v34  ;;  %v2183_v38 = vld [vmem:[%s2806_s2 + $0x60] sm:$0xff]   ;;  %v2185_v40 = vld [vmem:[%s2806_s2 + $0x70] sm:$0xff]  }
 0x1f8   :  { %689 = vadd.xlane.f32.xlu1 %v687_v41  ;;  %v688_v42 = vmul.f32 %v677_v39, %v677_v39  ;;  %2015 = vmatprep.subr.bf16.mxu1 %v2243_v2  ;;  %v2186_v41 = vld [vmem:[%s2806_s2 + $0x78] sm:$0xff]  }
 0x1fa   :  { %682 = vadd.xlane.f32.xlu0 %v677_v39 }
 0x1fb   :  { %2016 = vmatpush3.bf16.msra.mxu1 %v2180_v35 }
 0x1fc   :  { %691 = vadd.xlane.f32.xlu1 %v688_v42  ;;  %2017 = vmatprep.subr.bf16.mxu1 %v2243_v2 }
 0x283   :  { %v681_v51 = vpop.xlane.xlu0 %680 }
 0x284   :  { %v685_v52 = vmul.f32 0.0078125, %v681_v51 }
 0x285   :  { %v690_v53 = vpop.xlane.xlu1 %689 }
 0x286   :  { %v695_v54 = vmul.f32 %v685_v52, %v685_v52  ;;  %v693_v55 = vmul.f32 0.0078125, %v690_v53  ;;  %v705_v4 = vsub.f32 0.0, %v685_v52 }
 0x287   :  { %v683_v56 = vpop.xlane.xlu0 %682 }
 0x288   :  { %v697_v57 = vsub.f32 %v693_v55, %v695_v54  ;;  %v686_v58 = vmul.f32 0.0078125, %v683_v56 }
 0x289   :  { %v692_v59 = vpop.xlane.xlu1 %691 }
 0x28a   :  { %v699_v60 = vmax.f32 %v697_v57, 0.0  ;;  %v696_v61 = vmul.f32 %v686_v58, %v686_v58  ;;  %v694_v62 = vmul.f32 0.0078125, %v692_v59  ;;  %v706_v9 = vsub.f32 0.0, %v686_v58 }
 0x28c   :  { %v701_v63 = vadd.f32 1e-05, %v699_v60  ;;  %v698_v0 = vsub.f32 %v694_v62, %v696_v61 }
 0x28e   :  { %2219 = vrsqrt.f32 %v701_v63  ;;  %v700_v1 = vmax.f32 %v698_v0, 0.0  ;;  %v1717_v0 = vld [vmem:[%s2812_s8] ss:$0 sm:$0xff] }
 0x290   :  { %v702_v3 = vadd.f32 1e-05, %v700_v1 }
 0x292   :  { %2221 = vrsqrt.f32 %v702_v3 }
 0x298   :  { %v2220_v5 = vpop.eup %2219 }
 0x299   :  { %v707_v6 = vmul.f32 %v2220_v5, %v705_v4  ;;  %v709_v7 = vmul.f32 %v2220_v5, %v674_v36  ;;  %v2181_v36 = vld [vmem:[%s2806_s2 + $0x50] sm:$0xff]   ;;  %v1718_v5 = vld [vmem:[%s2813_s9] ss:$0 sm:$0xff] }
 0x29a   :  { %2018 = vmatpush3.bf16.msra.mxu1 %v2181_v36 }
 0x29b   :  { %v711_v10 = vadd.f32 %v709_v7, %v707_v6  ;;  %2019 = vmatprep.subr.bf16.mxu1 %v2243_v2 }
 0x29c   :  { %v2222_v11 = vpop.eup %2221 }
 0x29d   :  { %v708_v12 = vmul.f32 %v2222_v11, %v706_v9  ;;  %v710_v13 = vmul.f32 %v2222_v11, %v677_v39  ;;  %v717_v14 = vmul.f32 %v1706_v8, %v711_v10  ;;  %v2184_v39 = vld [vmem:[%s2806_s2 + $0x68] sm:$0xff]  }
 0x29e   :  { %2020 = vmatpush3.bf16.msra.mxu1 %v2182_v37 }
 0x29f   :  { %v712_v16 = vadd.f32 %v710_v13, %v708_v12  ;;  %v723_v18 = vadd.f32 %v1707_v15, %v717_v14  ;;  %2021 = vmatprep.subr.bf16.mxu1 %v2243_v2 }
 0x2a1   :  { %v718_v17 = vmul.f32 %v1706_v8, %v712_v16  ;;  %v725_v20 = vmax.f32 %v723_v18, 0.0  ;;  %v1735_v16 = vld [vmem:[%s2807_s3 + $0x1] ss:$0 sm:$0xff] }
 0x2a2   :  { %2022 = vmatpush3.bf16.msra.mxu1 %v2183_v38 }
 0x2a3   :  { %v724_v19 = vadd.f32 %v1707_v15, %v718_v17  ;;  %2023 = vmatprep.subr.bf16.mxu1 %v2243_v2 }
 0x2a5   :  { %v726_v21 = vmax.f32 %v724_v19, 0.0 }
 0x2a6   :  { %2024 = vmatpush3.bf16.msra.mxu1 %v2184_v39 }
 0x2a7   :  { %v727_v22 = vpack.c.bf16 %v726_v21, %v725_v20  ;;  %2025 = vmatprep.subr.bf16.mxu1 %v2243_v2 }
 0x2a9   :  { %2010 = vmatmul.mubr.bf16.vlgmr.msra.gmra.mrb[8].mxu0 %v727_v22 }
 0x2aa   :  { %2049 = vmatprep.mubr.msk.bf16.mxu0 %vm2244_vm0, %v2243_v2  ;;  %2026 = vmatpush3.bf16.msra.mxu1 %v2185_v40 }
 0x2ab   :  { %2027 = vmatprep.subr.bf16.mxu1 %v2243_v2 }
 0x2ae   :  { %2028 = vmatpush3.bf16.msra.mxu1 %v2186_v41 }
 0x2af   :  { %2053 = vmatprep.subr.bf16.mxu1 %v2243_v2 }
 0x37c   :  { %v830_v24 = vpop.f32.mrb[8].mxu0 }
 0x37d   :  { %v831_v25 = vadd.f32 %v1708_v23, %v830_v24  ;;  %v2011_v26 = vpop.f32.mrb[9].mxu0  ;;  %v2188_v24 = vld [vmem:[%s2808_s6 + $0x48] sm:$0xff]  }
 0x37e   :  { %v833_v27 = vpop.f32.mrb[10].mxu0  ;;  %v2190_v26 = vld [vmem:[%s2808_s6 + $0x58] sm:$0xff]  }
 0x37f   :  { %v834_v28 = vadd.f32 %v1708_v23, %v833_v27  ;;  %837 = vadd.xlane.f32.xlu0 %v831_v25  ;;  %v2012_v29 = vpop.f32.mrb[11].mxu0  ;;  %v843_v31 = vmul.f32 %v831_v25, %v831_v25  ;;  %v2187_v23 = vld [vmem:[%s2808_s6 + $0x40] sm:$0xff]  }
 0x380   :  { %2034 = vmatpush3.bf16.msra.mxu0 %v2187_v23  ;;  %v2191_v27 = vld [vmem:[%s2808_s6 + $0x60] sm:$0xff]   ;;  %v2193_v29 = vld [vmem:[%s2808_s6 + $0x70] sm:$0xff]  }
 0x381   :  { %839 = vadd.xlane.f32.xlu1 %v834_v28  ;;  %v844_v33 = vmul.f32 %v834_v28, %v834_v28  ;;  %2035 = vmatprep.subr.bf16.mxu0 %v2243_v2 }
 0x383   :  { %845 = vadd.xlane.f32.xlu0 %v843_v31  ;;  %v2194_v31 = vld [vmem:[%s2808_s6 + $0x78] sm:$0xff]  }
 0x384   :  { %2036 = vmatpush3.bf16.msra.mxu0 %v2188_v24 }
 0x385   :  { %847 = vadd.xlane.f32.xlu1 %v844_v33  ;;  %2037 = vmatprep.subr.bf16.mxu0 %v2243_v2 }
 0x40c   :  { %v838_v42 = vpop.xlane.xlu0 %837 }
 0x40d   :  { %v841_v43 = vmul.f32 0.0078125, %v838_v42 }
 0x40e   :  { %v840_v44 = vpop.xlane.xlu1 %839 }
 0x40f   :  { %v842_v45 = vmul.f32 0.0078125, %v840_v44  ;;  %v851_v47 = vmul.f32 %v841_v43, %v841_v43  ;;  %v861_v58 = vsub.f32 0.0, %v841_v43 }
 0x410   :  { %v846_v46 = vpop.xlane.xlu0 %845 }
 0x411   :  { %v849_v48 = vmul.f32 0.0078125, %v846_v46  ;;  %v852_v50 = vmul.f32 %v842_v45, %v842_v45  ;;  %v862_v60 = vsub.f32 0.0, %v842_v45 }
 0x412   :  { %v848_v49 = vpop.xlane.xlu1 %847 }
 0x413   :  { %v853_v51 = vsub.f32 %v849_v48, %v851_v47  ;;  %v850_v52 = vmul.f32 0.0078125, %v848_v49 }
 0x415   :  { %v855_v53 = vmax.f32 %v853_v51, 0.0  ;;  %v854_v54 = vsub.f32 %v850_v52, %v852_v50 }
 0x417   :  { %v857_v55 = vadd.f32 1e-05, %v855_v53  ;;  %v856_v56 = vmax.f32 %v854_v54, 0.0 }
 0x419   :  { %2223 = vrsqrt.f32 %v857_v55  ;;  %v858_v57 = vadd.f32 1e-05, %v856_v56  ;;  %v1744_v55 = vld [vmem:[%s2809_s4 + $0x1] ss:$0 sm:$0xff] }
 0x41b   :  { %2225 = vrsqrt.f32 %v858_v57 }
 0x423   :  { %v2224_v59 = vpop.eup %2223 }
 0x424   :  { %v863_v61 = vmul.f32 %v2224_v59, %v861_v58  ;;  %v865_v62 = vmul.f32 %v2224_v59, %v831_v25  ;;  %v2189_v25 = vld [vmem:[%s2808_s6 + $0x50] sm:$0xff]   ;;  %v1745_v59 = vld [vmem:[%s2810_s5 + $0x1] ss:$0 sm:$0xff] }
 0x425   :  { %v2226_v63 = vpop.eup %2225  ;;  %2038 = vmatpush3.bf16.msra.mxu0 %v2189_v25 }
 0x426   :  { %v864_v1 = vmul.f32 %v2226_v63, %v862_v60  ;;  %v866_v3 = vmul.f32 %v2226_v63, %v834_v28  ;;  %v867_v4 = vadd.f32 %v865_v62, %v863_v61  ;;  %2039 = vmatprep.subr.bf16.mxu0 %v2243_v2  ;;  %v2192_v28 = vld [vmem:[%s2808_s6 + $0x68] sm:$0xff]  }
 0x428   :  { %v868_v6 = vadd.f32 %v866_v3, %v864_v1  ;;  %v873_v7 = vmul.f32 %v1717_v0, %v867_v4 }
 0x429   :  { %2040 = vmatpush3.bf16.msra.mxu0 %v2190_v26 }
 0x42a   :  { %v874_v8 = vmul.f32 %v1717_v0, %v868_v6  ;;  %v879_v9 = vadd.f32 %v1718_v5, %v873_v7  ;;  %2041 = vmatprep.subr.bf16.mxu0 %v2243_v2 }
 0x42c   :  { %v880_v10 = vadd.f32 %v1718_v5, %v874_v8  ;;  %v881_v11 = vmax.f32 %v879_v9, 0.0  ;;  %v1762_v5 = vld [vmem:[%s2811_s7 + $0x1] ss:$0 sm:$0xff] }
 0x42d   :  { %2042 = vmatpush3.bf16.msra.mxu0 %v2191_v27 }
 0x42e   :  { %v882_v12 = vmax.f32 %v880_v10, 0.0  ;;  %v2616_v13 = vadd.f32 %v881_v11, %v2523_v30  ;;  %2043 = vmatprep.subr.bf16.mxu0 %v2243_v2 }
 0x430   :  { %v2619_v14 = vadd.f32 %v882_v12, %v2525_v32 }
 0x431   :  { %2044 = vmatpush3.bf16.msra.mxu0 %v2192_v28 }
 0x432   :  { %v891_v15 = vpack.c.bf16 %v2619_v14, %v2616_v13  ;;  %2045 = vmatprep.subr.bf16.mxu0 %v2243_v2 }
 0x434   :  { %2030 = vmatmul.mubr.bf16.vlgmr.msra.gmra.mrb[8].mxu1 %v891_v15 }
 0x435   :  { %2069 = vmatprep.mubr.msk.bf16.mxu1 %vm2244_vm0, %v2243_v2  ;;  %2046 = vmatpush3.bf16.msra.mxu0 %v2193_v29 }
 0x436   :  { %2047 = vmatprep.subr.bf16.mxu0 %v2243_v2 }
 0x439   :  { %2048 = vmatpush3.bf16.msra.mxu0 %v2194_v31 }
 0x43a   :  { %2073 = vmatprep.subr.bf16.mxu0 %v2243_v2 }
 0x507   :  { %v995_v17 = vpop.f32.mrb[8].mxu1 }
 0x508   :  { %v996_v18 = vadd.f32 %v1735_v16, %v995_v17  ;;  %v2031_v19 = vpop.f32.mrb[9].mxu1  ;;  %v2196_v17 = vld [vmem:[%s2806_s2 + $0x88] sm:$0xff]  }
 0x509   :  { %v998_v20 = vpop.f32.mrb[10].mxu1  ;;  %v2198_v19 = vld [vmem:[%s2806_s2 + $0x98] sm:$0xff]  }
 0x50a   :  { %v999_v30 = vadd.f32 %v1735_v16, %v998_v20  ;;  %1002 = vadd.xlane.f32.xlu0 %v996_v18  ;;  %v2032_v21 = vpop.f32.mrb[11].mxu1  ;;  %v1008_v32 = vmul.f32 %v996_v18, %v996_v18  ;;  %v2195_v16 = vld [vmem:[%s2806_s2 + $0x80] sm:$0xff]  }
 0x50b   :  { %2054 = vmatpush3.bf16.msra.mxu1 %v2195_v16  ;;  %v2199_v20 = vld [vmem:[%s2806_s2 + $0xa0] sm:$0xff]   ;;  %v2201_v21 = vld [vmem:[%s2806_s2 + $0xb0] sm:$0xff]  }
 0x50c   :  { %1004 = vadd.xlane.f32.xlu1 %v999_v30  ;;  %v1009_v22 = vmul.f32 %v999_v30, %v999_v30  ;;  %2055 = vmatprep.subr.bf16.mxu1 %v2243_v2 }
 0x50e   :  { %1010 = vadd.xlane.f32.xlu0 %v1008_v32  ;;  %v2202_v32 = vld [vmem:[%s2806_s2 + $0xb8] sm:$0xff]  }
 0x50f   :  { %2056 = vmatpush3.bf16.msra.mxu1 %v2196_v17 }
 0x510   :  { %1012 = vadd.xlane.f32.xlu1 %v1009_v22  ;;  %2057 = vmatprep.subr.bf16.mxu1 %v2243_v2 }
 0x597   :  { %v1003_v33 = vpop.xlane.xlu0 %1002 }
 0x598   :  { %v1006_v34 = vmul.f32 0.0078125, %v1003_v33 }
 0x599   :  { %v1005_v35 = vpop.xlane.xlu1 %1004 }
 0x59a   :  { %v1007_v36 = vmul.f32 0.0078125, %v1005_v35  ;;  %v1016_v38 = vmul.f32 %v1006_v34, %v1006_v34  ;;  %v1026_v49 = vsub.f32 0.0, %v1006_v34 }
 0x59b   :  { %v1011_v37 = vpop.xlane.xlu0 %1010 }
 0x59c   :  { %v1014_v39 = vmul.f32 0.0078125, %v1011_v37  ;;  %v1017_v41 = vmul.f32 %v1007_v36, %v1007_v36  ;;  %v1027_v51 = vsub.f32 0.0, %v1007_v36 }
 0x59d   :  { %v1013_v40 = vpop.xlane.xlu1 %1012 }
 0x59e   :  { %v1018_v42 = vsub.f32 %v1014_v39, %v1016_v38  ;;  %v1015_v43 = vmul.f32 0.0078125, %v1013_v40 }
 0x5a0   :  { %v1020_v44 = vmax.f32 %v1018_v42, 0.0  ;;  %v1019_v45 = vsub.f32 %v1015_v43, %v1017_v41 }
 0x5a2   :  { %v1022_v46 = vadd.f32 1e-05, %v1020_v44  ;;  %v1021_v47 = vmax.f32 %v1019_v45, 0.0 }
 0x5a4   :  { %2227 = vrsqrt.f32 %v1022_v46  ;;  %v1023_v48 = vadd.f32 1e-05, %v1021_v47  ;;  %v1771_v46 = vld [vmem:[%s2812_s8 + $0x1] ss:$0 sm:$0xff] }
 0x5a6   :  { %2229 = vrsqrt.f32 %v1023_v48 }
 0x5ae   :  { %v2228_v50 = vpop.eup %2227 }
 0x5af   :  { %v1028_v52 = vmul.f32 %v2228_v50, %v1026_v49  ;;  %v1030_v53 = vmul.f32 %v2228_v50, %v996_v18  ;;  %v2197_v18 = vld [vmem:[%s2806_s2 + $0x90] sm:$0xff]   ;;  %v1772_v50 = vld [vmem:[%s2813_s9 + $0x1] ss:$0 sm:$0xff] }
 0x5b0   :  { %v2230_v54 = vpop.eup %2229  ;;  %2058 = vmatpush3.bf16.msra.mxu1 %v2197_v18 }
 0x5b1   :  { %v1029_v56 = vmul.f32 %v2230_v54, %v1027_v51  ;;  %v1031_v57 = vmul.f32 %v2230_v54, %v999_v30  ;;  %v1032_v58 = vadd.f32 %v1030_v53, %v1028_v52  ;;  %2059 = vmatprep.subr.bf16.mxu1 %v2243_v2  ;;  %v2200_v30 = vld [vmem:[%s2806_s2 + $0xa8] sm:$0xff]  }
 0x5b3   :  { %v1033_v60 = vadd.f32 %v1031_v57, %v1029_v56  ;;  %v1038_v61 = vmul.f32 %v1744_v55, %v1032_v58 }
 0x5b4   :  { %2060 = vmatpush3.bf16.msra.mxu1 %v2198_v19 }
 0x5b5   :  { %v1039_v62 = vmul.f32 %v1744_v55, %v1033_v60  ;;  %v1044_v63 = vadd.f32 %v1745_v59, %v1038_v61  ;;  %2061 = vmatprep.subr.bf16.mxu1 %v2243_v2  ;;  %v1789_v61 = vld [vmem:[%s2807_s3 + $0x2] ss:$0 sm:$0xff] }
 0x5b7   :  { %v1045_v0 = vadd.f32 %v1745_v59, %v1039_v62  ;;  %v1046_v1 = vmax.f32 %v1044_v63, 0.0 }
 0x5b8   :  { %2062 = vmatpush3.bf16.msra.mxu1 %v2199_v20 }
 0x5b9   :  { %v1047_v3 = vmax.f32 %v1045_v0, 0.0  ;;  %2063 = vmatprep.subr.bf16.mxu1 %v2243_v2 }
 0x5bb   :  { %v1048_v4 = vpack.c.bf16 %v1047_v3, %v1046_v1 }
 0x5bc   :  { %2064 = vmatpush3.bf16.msra.mxu1 %v2200_v30 }
 0x5bd   :  { %2050 = vmatmul.mubr.bf16.vlgmr.msra.gmra.mrb[12].mxu0 %v1048_v4  ;;  %2065 = vmatprep.subr.bf16.mxu1 %v2243_v2 }
 0x5be   :  { %2089 = vmatprep.mubr.msk.bf16.mxu0 %vm2244_vm0, %v2243_v2 }
 0x5c0   :  { %2066 = vmatpush3.bf16.msra.mxu1 %v2201_v21 }
 0x5c1   :  { %2067 = vmatprep.subr.bf16.mxu1 %v2243_v2 }
 0x5c4   :  { %2068 = vmatpush3.bf16.msra.mxu1 %v2202_v32 }
 0x5c5   :  { %2093 = vmatprep.subr.bf16.mxu1 %v2243_v2 }
 0x690   :  { %v1152_v6 = vpop.f32.mrb[12].mxu0 }
 0x691   :  { %v1153_v7 = vadd.f32 %v1762_v5, %v1152_v6  ;;  %v2051_v8 = vpop.f32.mrb[13].mxu0  ;;  %v2204_v6 = vld [vmem:[%s2808_s6 + $0x88] sm:$0xff]  }
 0x692   :  { %v1155_v9 = vpop.f32.mrb[14].mxu0  ;;  %v2206_v8 = vld [vmem:[%s2808_s6 + $0x98] sm:$0xff]  }
 0x693   :  { %v1156_v10 = vadd.f32 %v1762_v5, %v1155_v9  ;;  %1159 = vadd.xlane.f32.xlu0 %v1153_v7  ;;  %v2052_v11 = vpop.f32.mrb[15].mxu0  ;;  %v1165_v12 = vmul.f32 %v1153_v7, %v1153_v7  ;;  %v2203_v5 = vld [vmem:[%s2808_s6 + $0x80] sm:$0xff]  }
 0x694   :  { %2074 = vmatpush3.bf16.msra.mxu0 %v2203_v5  ;;  %v2207_v9 = vld [vmem:[%s2808_s6 + $0xa0] sm:$0xff]   ;;  %v2209_v11 = vld [vmem:[%s2808_s6 + $0xb0] sm:$0xff]  }
 0x695   :  { %1161 = vadd.xlane.f32.xlu1 %v1156_v10  ;;  %v1166_v15 = vmul.f32 %v1156_v10, %v1156_v10  ;;  %2075 = vmatprep.subr.bf16.mxu0 %v2243_v2 }
 0x697   :  { %1167 = vadd.xlane.f32.xlu0 %v1165_v12  ;;  %v2210_v12 = vld [vmem:[%s2808_s6 + $0xb8] sm:$0xff]  }
 0x698   :  { %2076 = vmatpush3.bf16.msra.mxu0 %v2204_v6 }
 0x699   :  { %1169 = vadd.xlane.f32.xlu1 %v1166_v15  ;;  %2077 = vmatprep.subr.bf16.mxu0 %v2243_v2 }
 0x720   :  { %v1160_v22 = vpop.xlane.xlu0 %1159 }
 0x721   :  { %v1163_v23 = vmul.f32 0.0078125, %v1160_v22 }
 0x722   :  { %v1162_v24 = vpop.xlane.xlu1 %1161 }
 0x723   :  { %v1164_v25 = vmul.f32 0.0078125, %v1162_v24  ;;  %v1173_v27 = vmul.f32 %v1163_v23, %v1163_v23  ;;  %v1183_v40 = vsub.f32 0.0, %v1163_v23 }
 0x724   :  { %v1168_v26 = vpop.xlane.xlu0 %1167 }
 0x725   :  { %v1171_v28 = vmul.f32 0.0078125, %v1168_v26  ;;  %v1174_v31 = vmul.f32 %v1164_v25, %v1164_v25  ;;  %v1184_v42 = vsub.f32 0.0, %v1164_v25 }
 0x726   :  { %v1170_v29 = vpop.xlane.xlu1 %1169 }
 0x727   :  { %v1175_v33 = vsub.f32 %v1171_v28, %v1173_v27  ;;  %v1172_v34 = vmul.f32 0.0078125, %v1170_v29 }
 0x729   :  { %v1177_v35 = vmax.f32 %v1175_v33, 0.0  ;;  %v1176_v36 = vsub.f32 %v1172_v34, %v1174_v31 }
 0x72b   :  { %v1179_v37 = vadd.f32 1e-05, %v1177_v35  ;;  %v1178_v38 = vmax.f32 %v1176_v36, 0.0 }
 0x72d   :  { %2231 = vrsqrt.f32 %v1179_v37  ;;  %v1180_v39 = vadd.f32 1e-05, %v1178_v38  ;;  %v1798_v37 = vld [vmem:[%s2809_s4 + $0x2] ss:$0 sm:$0xff] }
 0x72f   :  { %2233 = vrsqrt.f32 %v1180_v39 }
 0x737   :  { %v2232_v41 = vpop.eup %2231 }
 0x738   :  { %v1185_v43 = vmul.f32 %v2232_v41, %v1183_v40  ;;  %v1187_v44 = vmul.f32 %v2232_v41, %v1153_v7  ;;  %v2205_v7 = vld [vmem:[%s2808_s6 + $0x90] sm:$0xff]   ;;  %v1799_v41 = vld [vmem:[%s2810_s5 + $0x2] ss:$0 sm:$0xff] }
 0x739   :  { %v2234_v45 = vpop.eup %2233  ;;  %2078 = vmatpush3.bf16.msra.mxu0 %v2205_v7 }
 0x73a   :  { %v1186_v47 = vmul.f32 %v2234_v45, %v1184_v42  ;;  %v1188_v48 = vmul.f32 %v2234_v45, %v1156_v10  ;;  %v1189_v49 = vadd.f32 %v1187_v44, %v1185_v43  ;;  %2079 = vmatprep.subr.bf16.mxu0 %v2243_v2  ;;  %v2208_v10 = vld [vmem:[%s2808_s6 + $0xa8] sm:$0xff]  }
 0x73c   :  { %v1190_v51 = vadd.f32 %v1188_v48, %v1186_v47  ;;  %v1195_v52 = vmul.f32 %v1771_v46, %v1189_v49 }
 0x73d   :  { %2080 = vmatpush3.bf16.msra.mxu0 %v2206_v8 }
 0x73e   :  { %v1196_v53 = vmul.f32 %v1771_v46, %v1190_v51  ;;  %v1201_v54 = vadd.f32 %v1772_v50, %v1195_v52  ;;  %2081 = vmatprep.subr.bf16.mxu0 %v2243_v2 }
 0x740   :  { %v1202_v55 = vadd.f32 %v1772_v50, %v1196_v53  ;;  %v1203_v56 = vmax.f32 %v1201_v54, 0.0  ;;  %v1816_v50 = vld [vmem:[%s2811_s7 + $0x2] ss:$0 sm:$0xff] }
 0x741   :  { %2082 = vmatpush3.bf16.msra.mxu0 %v2207_v9 }
 0x742   :  { %v1204_v57 = vmax.f32 %v1202_v55, 0.0  ;;  %v2710_v58 = vadd.f32 %v1203_v56, %v2616_v13  ;;  %2083 = vmatprep.subr.bf16.mxu0 %v2243_v2 }
 0x744   :  { %v2713_v59 = vadd.f32 %v1204_v57, %v2619_v14 }
 0x745   :  { %2084 = vmatpush3.bf16.msra.mxu0 %v2208_v10 }
 0x746   :  { %v1213_v60 = vpack.c.bf16 %v2713_v59, %v2710_v58  ;;  %2085 = vmatprep.subr.bf16.mxu0 %v2243_v2 }
 0x748   :  { %2070 = vmatmul.mubr.bf16.vlgmr.msra.gmra.mrb[12].mxu1 %v1213_v60 }
 0x749   :  { %2109 = vmatprep.mubr.msk.bf16.mxu1 %vm2244_vm0, %v2243_v2  ;;  %2086 = vmatpush3.bf16.msra.mxu0 %v2209_v11 }
 0x74a   :  { %2087 = vmatprep.subr.bf16.mxu0 %v2243_v2 }
 0x74d   :  { %2088 = vmatpush3.bf16.msra.mxu0 %v2210_v12 }
 0x81b   :  { %v1317_v62 = vpop.f32.mrb[12].mxu1 }
 0x81c   :  { %v1318_v63 = vadd.f32 %v1789_v61, %v1317_v62  ;;  %v2071_v0 = vpop.f32.mrb[13].mxu1  ;;  %v2212_v62 = vld [vmem:[%s2814_s10 + $0x8] sm:$0xff]  }
 0x81d   :  { %v1320_v1 = vpop.f32.mrb[14].mxu1  ;;  %v2214_v0 = vld [vmem:[%s2814_s10 + $0x18] sm:$0xff]  }
 0x81e   :  { %v1321_v13 = vadd.f32 %v1789_v61, %v1320_v1  ;;  %1324 = vadd.xlane.f32.xlu0 %v1318_v63  ;;  %v2072_v3 = vpop.f32.mrb[15].mxu1  ;;  %v1330_v14 = vmul.f32 %v1318_v63, %v1318_v63  ;;  %v2211_v61 = vld [vmem:[%s2814_s10] sm:$0xff]  }
 0x81f   :  { %2094 = vmatpush3.bf16.msra.mxu1 %v2211_v61  ;;  %v2215_v1 = vld [vmem:[%s2814_s10 + $0x20] sm:$0xff]   ;;  %v2217_v3 = vld [vmem:[%s2814_s10 + $0x30] sm:$0xff]  }
 0x820   :  { %1326 = vadd.xlane.f32.xlu1 %v1321_v13  ;;  %v1331_v4 = vmul.f32 %v1321_v13, %v1321_v13  ;;  %2095 = vmatprep.subr.bf16.mxu1 %v2243_v2 }
 0x822   :  { %1332 = vadd.xlane.f32.xlu0 %v1330_v14  ;;  %v2218_v14 = vld [vmem:[%s2814_s10 + $0x38] sm:$0xff]  }
 0x823   :  { %2096 = vmatpush3.bf16.msra.mxu1 %v2212_v62 }
 0x824   :  { %1334 = vadd.xlane.f32.xlu1 %v1331_v4  ;;  %2097 = vmatprep.subr.bf16.mxu1 %v2243_v2 }
 0x8ab   :  { %v1325_v15 = vpop.xlane.xlu0 %1324 }
 0x8ac   :  { %v1328_v16 = vmul.f32 0.0078125, %v1325_v15 }
 0x8ad   :  { %v1327_v17 = vpop.xlane.xlu1 %1326 }
 0x8ae   :  { %v1329_v18 = vmul.f32 0.0078125, %v1327_v17  ;;  %v1338_v20 = vmul.f32 %v1328_v16, %v1328_v16  ;;  %v1348_v29 = vsub.f32 0.0, %v1328_v16 }
 0x8af   :  { %v1333_v19 = vpop.xlane.xlu0 %1332 }
 0x8b0   :  { %v1336_v30 = vmul.f32 0.0078125, %v1333_v19  ;;  %v1339_v32 = vmul.f32 %v1329_v18, %v1329_v18  ;;  %v1349_v33 = vsub.f32 0.0, %v1329_v18 }
 0x8b1   :  { %v1335_v21 = vpop.xlane.xlu1 %1334 }
 0x8b2   :  { %v1340_v22 = vsub.f32 %v1336_v30, %v1338_v20  ;;  %v1337_v23 = vmul.f32 0.0078125, %v1335_v21 }
 0x8b4   :  { %v1342_v24 = vmax.f32 %v1340_v22, 0.0  ;;  %v1341_v25 = vsub.f32 %v1337_v23, %v1339_v32 }
 0x8b6   :  { %v1344_v26 = vadd.f32 1e-05, %v1342_v24  ;;  %v1343_v27 = vmax.f32 %v1341_v25, 0.0  ;;  %v1825_v25 = vld [vmem:[%s2812_s8 + $0x2] ss:$0 sm:$0xff] }
 0x8b8   :  { %2235 = vrsqrt.f32 %v1344_v26  ;;  %v1345_v28 = vadd.f32 1e-05, %v1343_v27 }
 0x8ba   :  { %2237 = vrsqrt.f32 %v1345_v28 }
 0x8c2   :  { %v2236_v31 = vpop.eup %2235 }
 0x8c3   :  { %v1350_v34 = vmul.f32 %v2236_v31, %v1348_v29  ;;  %v1352_v35 = vmul.f32 %v2236_v31, %v1318_v63  ;;  %v2213_v63 = vld [vmem:[%s2814_s10 + $0x10] sm:$0xff]   ;;  %v1826_v29 = vld [vmem:[%s2813_s9 + $0x2] ss:$0 sm:$0xff] }
 0x8c4   :  { %v2238_v36 = vpop.eup %2237  ;;  %2098 = vmatpush3.bf16.msra.mxu1 %v2213_v63 }
 0x8c5   :  { %v1351_v38 = vmul.f32 %v2238_v36, %v1349_v33  ;;  %v1353_v39 = vmul.f32 %v2238_v36, %v1321_v13  ;;  %v1354_v40 = vadd.f32 %v1352_v35, %v1350_v34  ;;  %2099 = vmatprep.subr.bf16.mxu1 %v2243_v2  ;;  %v2216_v13 = vld [vmem:[%s2814_s10 + $0x28] sm:$0xff]  }
 0x8c7   :  { %v1355_v42 = vadd.f32 %v1353_v39, %v1351_v38  ;;  %v1360_v43 = vmul.f32 %v1798_v37, %v1354_v40 }
 0x8c8   :  { %2100 = vmatpush3.bf16.msra.mxu1 %v2214_v0 }
 0x8c9   :  { %v1361_v44 = vmul.f32 %v1798_v37, %v1355_v42  ;;  %v1366_v45 = vadd.f32 %v1799_v41, %v1360_v43  ;;  %2101 = vmatprep.subr.bf16.mxu1 %v2243_v2 }
 0x8cb   :  { %v1367_v46 = vadd.f32 %v1799_v41, %v1361_v44  ;;  %v1368_v47 = vmax.f32 %v1366_v45, 0.0 }
 0x8cc   :  { %2102 = vmatpush3.bf16.msra.mxu1 %v2215_v1 }
 0x8cd   :  { %v1369_v48 = vmax.f32 %v1367_v46, 0.0  ;;  %2103 = vmatprep.subr.bf16.mxu1 %v2243_v2 }
 0x8cf   :  { %v1370_v49 = vpack.c.bf16 %v1369_v48, %v1368_v47 }
 0x8d0   :  { %2104 = vmatpush3.bf16.msra.mxu1 %v2216_v13 }
 0x8d1   :  { %2090 = vmatmul.mubr.bf16.vlgmr.msra.gmra.mrb[16].mxu0 %v1370_v49  ;;  %2105 = vmatprep.subr.bf16.mxu1 %v2243_v2 }
 0x8d4   :  { %2106 = vmatpush3.bf16.msra.mxu1 %v2217_v3 }
 0x8d5   :  { %2107 = vmatprep.subr.bf16.mxu1 %v2243_v2 }
 0x8d8   :  { %2108 = vmatpush3.bf16.msra.mxu1 %v2218_v14 }
 0x9a4   :  { %v1474_v51 = vpop.f32.mrb[16].mxu0 }
 0x9a5   :  { %v1475_v52 = vadd.f32 %v1816_v50, %v1474_v51  ;;  %v2091_v53 = vpop.f32.mrb[17].mxu0 }
 0x9a6   :  { %v1477_v54 = vpop.f32.mrb[18].mxu0 }
 0x9a7   :  { %v1478_v55 = vadd.f32 %v1816_v50, %v1477_v54  ;;  %1481 = vadd.xlane.f32.xlu0 %v1475_v52  ;;  %v2092_v56 = vpop.f32.mrb[19].mxu0  ;;  %v1487_v57 = vmul.f32 %v1475_v52, %v1475_v52 }
 0x9a9   :  { %1483 = vadd.xlane.f32.xlu1 %v1478_v55  ;;  %v1488_v60 = vmul.f32 %v1478_v55, %v1478_v55 }
 0x9ab   :  { %1489 = vadd.xlane.f32.xlu0 %v1487_v57 }
 0x9ad   :  { %1491 = vadd.xlane.f32.xlu1 %v1488_v60 }
 0xa34   :  { %v1482_v4 = vpop.xlane.xlu0 %1481 }
 0xa35   :  { %v1485_v5 = vmul.f32 0.0078125, %v1482_v4 }
 0xa36   :  { %v1484_v6 = vpop.xlane.xlu1 %1483 }
 0xa37   :  { %v1486_v7 = vmul.f32 0.0078125, %v1484_v6  ;;  %v1495_v9 = vmul.f32 %v1485_v5, %v1485_v5  ;;  %v1505_v2 = vsub.f32 0.0, %v1485_v5 }
 0xa38   :  { %v1490_v8 = vpop.xlane.xlu0 %1489 }
 0xa39   :  { %v1493_v10 = vmul.f32 0.0078125, %v1490_v8  ;;  %v1496_v12 = vmul.f32 %v1486_v7, %v1486_v7  ;;  %v1506_v32 = vsub.f32 0.0, %v1486_v7 }
 0xa3a   :  { %v1492_v11 = vpop.xlane.xlu1 %1491 }
 0xa3b   :  { %v1497_v15 = vsub.f32 %v1493_v10, %v1495_v9  ;;  %v1494_v16 = vmul.f32 0.0078125, %v1492_v11 }
 0xa3d   :  { %v1499_v17 = vmax.f32 %v1497_v15, 0.0  ;;  %v1498_v18 = vsub.f32 %v1494_v16, %v1496_v12 }
 0xa3f   :  { %v1501_v19 = vadd.f32 1e-05, %v1499_v17  ;;  %v1500_v20 = vmax.f32 %v1498_v18, 0.0 }
 0xa41   :  { %2239 = vrsqrt.f32 %v1501_v19  ;;  %v1502_v30 = vadd.f32 1e-05, %v1500_v20 }
 0xa43   :  { %2241 = vrsqrt.f32 %v1502_v30 }
 0xa4b   :  { %v2240_v21 = vpop.eup %2239 }
 0xa4c   :  { %v1507_v22 = vmul.f32 %v2240_v21, %v1505_v2  ;;  %v1509_v23 = vmul.f32 %v2240_v21, %v1475_v52 }
 0xa4d   :  { %v2242_v24 = vpop.eup %2241 }
 0xa4e   :  { %v1508_v26 = vmul.f32 %v2242_v24, %v1506_v32  ;;  %v1510_v27 = vmul.f32 %v2242_v24, %v1478_v55  ;;  %v1511_v28 = vadd.f32 %v1509_v23, %v1507_v22 }
 0xa50   :  { %v1512_v31 = vadd.f32 %v1510_v27, %v1508_v26  ;;  %v1517_v33 = vmul.f32 %v1825_v25, %v1511_v28 }
 0xa52   :  { %v1518_v34 = vmul.f32 %v1825_v25, %v1512_v31  ;;  %v1523_v35 = vadd.f32 %v1826_v29, %v1517_v33 }
 0xa54   :  { %v1524_v36 = vadd.f32 %v1826_v29, %v1518_v34  ;;  %v1525_v37 = vmax.f32 %v1523_v35, 0.0 }
 0xa56   :  { %v1526_v38 = vmax.f32 %v1524_v36, 0.0  ;;  %v1527_v39 = vadd.f32 %v1525_v37, %v2710_v58 }
 0xa58   :  { %v1528_v40 = vadd.f32 %v1526_v38, %v2713_v59 }
 0xa5a   :  { %v1529_v41 = vpack.c.bf16 %v1528_v40, %v1527_v39 }
 0xa5c   :  { %2110 = vmatmul.mubr.bf16.vlgmr.msra.gmra.mrb[16].mxu1 %v1529_v41 }
 0xb2f   :  { %v1628_v42 = vpop.f32.mrb[16].mxu1 }
 0xb30   :  { %v2111_v43 = vpop.f32.mrb[17].mxu1 }
 0xb31   :  { %v1631_v44 = vpop.f32.mrb[18].mxu1 }
 0xb32   :  { %v1842_v45 = vpack.c.bf16 %v1631_v44, %v1628_v42  ;;  %v2112_v46 = vpop.f32.mrb[19].mxu1 }
 0xb34   :  { %1843 = vst [vmem:[%s2815_s11] sm:$0xff] %v1842_v45  }

</bundles_post_ra>
